<compile_context>
chip_gen: v5e
topology: v5e:2x2
jax: 0.10.0
libtpu: 0.0.40
codegen_flags: <defaults>
</compile_context>

<pallas_src>
import math
import functools

import jax
import jax.numpy as jnp
from jax import lax
from jax.experimental import pallas as pl
from jax.experimental.pallas import tpu as pltpu

# ----------------------------- configuration ------------------------------
EMBED = 32            # embed_size
HEADS = 4             # num_heads
HEAD = EMBED // HEADS
LAYERS = 2            # num_attn_layers
B = 2                 # batch
S = 8                 # sequence length
NUM_ITEMS = 10        # synthetic size of the USE / id_to_org lookup table
MAX_POS = 20          # max_pos (positional embedding table size; unused branch)

ABLATION = dict(time_include=True,
                qrelation_include=True,
                respSRLrelation_include=True)


# ------------------------- fused forward Pallas kernel ---------------------
def _srl_kt_kernel(l_ref, x_ref, qe_ref, rel_ref, rrel_ref, ts_ref,
                   w_in_ref, b_in_ref,
                   wq_ref, bq_ref, wkv_ref, bkv_ref,
                   w_f1a_ref, w_f1b_ref, b_f1_ref, w_f2_ref, b_f2_ref,
                   out_ref, attn_ref,
                   *, time_include, qrel_include, resp_include,
                   batch, seq, heads, embed, layers):
    hd = embed // heads
    inv_sqrt_hd = 1.0 / math.sqrt(hd)

    # scalars from SMEM, hoisted (1-l) factors
    l1 = l_ref[0]
    l2 = l_ref[1]
    l3 = l_ref[2]
    one_m_l1 = 1.0 - l1
    one_m_l2 = 1.0 - l2
    one_m_l3 = 1.0 - l3

    # ---- input interaction projection: relu(x @ W_in + b_in) ----
    inputs2d = jnp.maximum(
        jnp.dot(x_ref[...], w_in_ref[...], preferred_element_type=jnp.float32)
        + b_in_ref[...], 0.0)                                   # (B*S, E)
    query2d = qe_ref[...]                                       # (B*S, E)

    # ---- loop-invariant attention pieces (shared by all layers/heads) ----
    row = lax.broadcasted_iota(jnp.int32, (seq, seq), 0)
    col = lax.broadcasted_iota(jnp.int32, (seq, seq), 1)
    fmask = col > row                                           # strict future mask
    fmaskf = fmask.astype(jnp.float32)

    if qrel_include:
        relm = rel_ref[...] * fmaskf[None]                      # (B,S,S)
        rel_attn = jax.nn.softmax(jnp.where(relm == 0.0, -10000.0, relm), axis=-1)
        l1_rel = l1 * rel_attn
    if resp_include:
        rrelm = rrel_ref[...] * fmaskf[None]
        rrel_attn = jax.nn.softmax(jnp.where(rrelm == 0.0, -10000.0, rrelm), axis=-1)
        l3_rrel = l3 * rrel_attn
    tsv = jnp.where(fmask[None], -jnp.inf, jnp.exp(-jnp.abs(ts_ref[...])))
    time_attn = jax.nn.softmax(tsv, axis=-1)
    l2_time = l2 * time_attn

    kv2d = inputs2d                  # key/value input of layer 0
    outputs3 = None                  # (B, S, E) running residual stream

    for layer in range(layers):
        is_last = layer == layers - 1

        # projections (query input is constant; K and V fused into one matmul)
        q2 = jnp.dot(query2d, wq_ref[layer],
                     preferred_element_type=jnp.float32) + bq_ref[layer]    # (B*S, E)
        kvp = jnp.dot(kv2d, wkv_ref[layer],
                      preferred_element_type=jnp.float32) + bkv_ref[layer]  # (B*S, 2E)

        q3 = q2.reshape(batch, seq, embed)
        k3 = kvp[:, :embed].reshape(batch, seq, embed)
        v3 = kvp[:, embed:].reshape(batch, seq, embed)

        head_outs = []
        for h in range(heads):
            sl = slice(h * hd, (h + 1) * hd)
            qh = q3[:, :, sl]
            kh = k3[:, :, sl]
            vh = v3[:, :, sl]

            scores = jnp.einsum('bqd,bkd->bqk', qh, kh,
                                preferred_element_type=jnp.float32)
            scores = scores * inv_sqrt_hd
            scores = jnp.where(fmask[None], -1e9, scores)
            prob = jax.nn.softmax(scores, axis=-1)

            if time_include:
                prob = one_m_l2 * prob + l2_time
            if qrel_include:
                prob = one_m_l1 * prob + l1_rel
            if resp_include:
                prob = one_m_l3 * prob + l3_rrel
            if not time_include:
                prob = l2 * prob

            ctx = jnp.einsum('bqk,bkd->bqd', prob, vh,
                             preferred_element_type=jnp.float32)   # (B,S,hd)
            head_outs.append(ctx)

            if is_last:
                attn_ref[h] = prob.astype(attn_ref.dtype)          # (B,S,S)

        ctx_all = jnp.concatenate(head_outs, axis=-1)              # (B,S,E), lane-dense

        if layer == 0:
            outputs3 = ctx_all                                     # dropout == identity
        else:
            outputs3 = outputs3 + jnp.maximum(ctx_all, 0.0)        # outputs + relu(residual)
        kv2d = outputs3.reshape(batch * seq, embed)

    # ---- final head: relu(outputs @ Wa + query @ Wb + b1) @ W2 + b2 ----
    h1 = (jnp.dot(kv2d, w_f1a_ref[...], preferred_element_type=jnp.float32)
          + jnp.dot(query2d, w_f1b_ref[...], preferred_element_type=jnp.float32)
          + b_f1_ref[...])
    h1 = jnp.maximum(h1, 0.0)
    out = jnp.dot(h1, w_f2_ref[...], preferred_element_type=jnp.float32) + b_f2_ref[...]
    out_ref[...] = out.astype(out_ref.dtype)


def srl_kt_pallas(packed, x_in, query2d, rel, rrel, ts, ablation):
    kernel = functools.partial(
        _srl_kt_kernel,
        time_include=ablation['time_include'],
        qrel_include=ablation['qrelation_include'],
        resp_include=ablation['respSRLrelation_include'],
        batch=B, seq=S, heads=HEADS, embed=EMBED, layers=LAYERS)

    smem_spec = pl.BlockSpec(memory_space=pltpu.MemorySpace.SMEM)
    vmem_specs = [pl.BlockSpec(memory_space=pltpu.MemorySpace.VMEM) for _ in range(16)]

    out2d, attn_hb = pl.pallas_call(
        kernel,
        out_shape=(jax.ShapeDtypeStruct((B * S, 1), jnp.float32),
                   jax.ShapeDtypeStruct((HEADS, B, S, S), jnp.float32)),
        in_specs=[smem_spec] + vmem_specs,
        out_specs=(pl.BlockSpec(memory_space=pltpu.MemorySpace.VMEM),
                   pl.BlockSpec(memory_space=pltpu.MemorySpace.VMEM)),
    )(packed['l123'], x_in, query2d, rel, rrel, ts,
      packed['w_in'], packed['b_in'],
      packed['wq'], packed['bq'], packed['wkv'], packed['bkv'],
      packed['w_f1a'], packed['w_f1b'], packed['b_f1'],
      packed['w_f2'], packed['b_f2'])
    return out2d, attn_hb


# ------------------------- model (JAX glue + fused kernel) -----------------
def srl_kt_forward(packed, item_inputs, label_inputs, type_inputs, item_ids,
                   rel, resp_rel, timestamp, item_types, qresp_inputs):
    E = EMBED

    # ---- get_inputs ----
    item_emb = packed['use_table'][item_inputs]                  # (B,S,E)
    pos_mask = (jnp.arange(S) > 0).astype(jnp.float32)[None, :, None]
    item_emb = item_emb * pos_mask                               # j==0 -> zeros
    type_emb = packed['item_type_embeds'][type_inputs]           # (B,S,E)
    label_rep = jnp.broadcast_to(label_inputs[..., None].astype(jnp.float32), (B, S, E))
    qresp_rep = jnp.broadcast_to(qresp_inputs[..., None].astype(jnp.float32), (B, S, E))
    x_in = jnp.concatenate([item_emb, type_emb, qresp_rep, label_rep], axis=-1)
    if not ABLATION['time_include']:
        # TODO(synk): PositionalEmbedding_AKT interaction branch only runs when
        # time_include == False; this configuration uses time_include == True.
        pass

    # ---- get_query ----
    query_embed = packed['use_table'][item_ids]                  # (B,S,E)

    out2d, attn_hb = srl_kt_pallas(packed,
                                   x_in.reshape(B * S, 4 * E),
                                   query_embed.reshape(B * S, E),
                                   rel, resp_rel, timestamp, ABLATION)
    out = out2d.reshape(B, S, 1)
    attn = attn_hb.transpose(1, 0, 2, 3)                         # (B,H,S,S)
    return out, attn


srl_kt_forward = jax.jit(srl_kt_forward)


# ----------------------------- parameter init ------------------------------
def _linear_init(key, in_f, out_f):
    k1, k2 = jax.random.split(key)
    bound = 1.0 / math.sqrt(in_f)
    W = jax.random.uniform(k1, (out_f, in_f), jnp.float32, -bound, bound)
    b = jax.random.uniform(k2, (out_f,), jnp.float32, -bound, bound)
    return W, b


def init_params(key):
    keys = jax.random.split(key, 16)
    use_table = 0.1 * jax.random.normal(keys[0], (NUM_ITEMS, EMBED), jnp.float32)
    item_type_embeds = jax.random.normal(keys[1], (5, EMBED), jnp.float32)
    item_type_embeds = item_type_embeds.at[0].set(0.0)           # padding_idx=0
    W_in_inter, b_in_inter = _linear_init(keys[2], 4 * EMBED, EMBED)

    attn_layers = []
    for i in range(LAYERS):
        kq, kk, kv = jax.random.split(keys[3 + i], 3)
        Wq, bq = _linear_init(kq, EMBED, EMBED)
        Wk, bk = _linear_init(kk, EMBED, EMBED)
        Wv, bv = _linear_init(kv, EMBED, EMBED)
        attn_layers.append(dict(Wq=Wq, bq=bq, Wk=Wk, bk=bk, Wv=Wv, bv=bv))

    W_f1, b_f1 = _linear_init(keys[8], 2 * EMBED, EMBED)
    W_f2, b_f2 = _linear_init(keys[9], EMBED, 1)
    l123 = jax.random.uniform(keys[10], (3,), jnp.float32)       # l1, l2, l3

    return dict(use_table=use_table,
                item_type_embeds=item_type_embeds,
                W_in_inter=W_in_inter, b_in_inter=b_in_inter,
                attn_layers=attn_layers,
                W_f1=W_f1, b_f1=b_f1, W_f2=W_f2, b_f2=b_f2,
                l123=l123)


def pack_params(params):
    """Pre-transpose / pack weights once: W stored (in,out), K&V fused, W_f1 split."""
    E = EMBED
    wq = jnp.stack([lp['Wq'].T for lp in params['attn_layers']])                 # (L,E,E)
    bq = jnp.stack([lp['bq'].reshape(1, E) for lp in params['attn_layers']])     # (L,1,E)
    wkv = jnp.stack([jnp.concatenate([lp['Wk'].T, lp['Wv'].T], axis=1)
                     for lp in params['attn_layers']])                           # (L,E,2E)
    bkv = jnp.stack([jnp.concatenate([lp['bk'], lp['bv']]).reshape(1, 2 * E)
                     for lp in params['attn_layers']])                           # (L,1,2E)
    return dict(
        use_table=params['use_table'],
        item_type_embeds=params['item_type_embeds'],
        w_in=params['W_in_inter'].T,                  # (4E, E)
        b_in=params['b_in_inter'].reshape(1, E),
        wq=wq, bq=bq, wkv=wkv, bkv=bkv,
        w_f1a=params['W_f1'][:, :E].T,                # (E, E) -> multiplies `outputs`
        w_f1b=params['W_f1'][:, E:].T,                # (E, E) -> multiplies `query_embed`
        b_f1=params['b_f1'].reshape(1, E),
        w_f2=params['W_f2'].T,                        # (E, 1)
        b_f2=params['b_f2'].reshape(1, 1),
        l123=params['l123'])


# --------------------------------- main -------------------------------------
if __name__ == "__main__":
    key = jax.random.PRNGKey(0)
    pkey, dkey = jax.random.split(key)
    params = init_params(pkey)
    packed = pack_params(params)

    dkeys = jax.random.split(dkey, 9)
    item_inputs = jax.random.randint(dkeys[0], (B, S), 0, NUM_ITEMS)
    item_ids = jax.random.randint(dkeys[1], (B, S), 0, NUM_ITEMS)
    label_inputs = jax.random.randint(dkeys[2], (B, S), 0, 2).astype(jnp.float32)
    qresp_inputs = jax.random.randint(dkeys[3], (B, S), 0, 2).astype(jnp.float32)
    type_inputs = jax.random.randint(dkeys[4], (B, S), 0, 5)
    item_types = jax.random.randint(dkeys[5], (B, S), 0, 5)
    rel = jax.random.uniform(dkeys[6], (B, S, S), jnp.float32)
    resp_rel = jax.random.uniform(dkeys[7], (B, S, S), jnp.float32)
    timestamp = jax.random.uniform(dkeys[8], (B, S, S), jnp.float32, 0.0, 10.0)

    out, attn = srl_kt_forward(packed, item_inputs, label_inputs, type_inputs,
                               item_ids, rel, resp_rel, timestamp, item_types,
                               qresp_inputs)
    jax.block_until_ready((out, attn))
    assert out.shape == (B, S, 1)
    assert attn.shape == (B, HEADS, S, S)
    print("KERNEL_OK")
</pallas_src>

<mosaic_0001>
module attributes {stable_mosaic.version = 11 : i64} {
  func.func @_srl_kt_kernel(%arg0: memref<3xf32, #tpu.memory_space<smem>>, %arg1: memref<16x128xf32, #tpu.memory_space<vmem>>, %arg2: memref<16x32xf32, #tpu.memory_space<vmem>>, %arg3: memref<2x8x8xf32, #tpu.memory_space<vmem>>, %arg4: memref<2x8x8xf32, #tpu.memory_space<vmem>>, %arg5: memref<2x8x8xf32, #tpu.memory_space<vmem>>, %arg6: memref<128x32xf32, #tpu.memory_space<vmem>>, %arg7: memref<1x32xf32, #tpu.memory_space<vmem>>, %arg8: memref<2x32x32xf32, #tpu.memory_space<vmem>>, %arg9: memref<2x1x32xf32, #tpu.memory_space<vmem>>, %arg10: memref<2x32x64xf32, #tpu.memory_space<vmem>>, %arg11: memref<2x1x64xf32, #tpu.memory_space<vmem>>, %arg12: memref<32x32xf32, #tpu.memory_space<vmem>>, %arg13: memref<32x32xf32, #tpu.memory_space<vmem>>, %arg14: memref<1x32xf32, #tpu.memory_space<vmem>>, %arg15: memref<32x1xf32, #tpu.memory_space<vmem>>, %arg16: memref<1x1xf32, #tpu.memory_space<vmem>>, %arg17: memref<16x1xf32, #tpu.memory_space<vmem>>, %arg18: memref<4x2x8x8xf32, #tpu.memory_space<vmem>>) attributes {dimension_semantics = [], scalar_prefetch = 0 : i64, scratch_operands = 0 : i64, tpu.core_type = #tpu.core_type<tc>} {
    %c0 = arith.constant 0 : index
    %0 = memref.load %arg0[%c0] : memref<3xf32, #tpu.memory_space<smem>>
    %c1 = arith.constant 1 : index
    %1 = memref.load %arg0[%c1] : memref<3xf32, #tpu.memory_space<smem>>
    %c2 = arith.constant 2 : index
    %2 = memref.load %arg0[%c2] : memref<3xf32, #tpu.memory_space<smem>>
    %cst = arith.constant 1.000000e+00 : f32
    %3 = arith.subf %cst, %0 : f32
    %cst_0 = arith.constant 1.000000e+00 : f32
    %4 = arith.subf %cst_0, %1 : f32
    %cst_1 = arith.constant 1.000000e+00 : f32
    %5 = arith.subf %cst_1, %2 : f32
    %c0_2 = arith.constant 0 : index
    %c0_3 = arith.constant 0 : index
    %6 = vector.load %arg1[%c0_2, %c0_3] : memref<16x128xf32, #tpu.memory_space<vmem>>, vector<16x128xf32>
    %c0_4 = arith.constant 0 : index
    %c0_5 = arith.constant 0 : index
    %7 = vector.load %arg6[%c0_4, %c0_5] : memref<128x32xf32, #tpu.memory_space<vmem>>, vector<128x32xf32>
    %cst_6 = arith.constant dense<0.000000e+00> : vector<16x32xf32>
    %8 = tpu.matmul %6, %7, %cst_6 {dimension_numbers = #tpu.dot_dimension_numbers<[1], [0], [0], [1], [0, 0, 1, 1], [], []>} : vector<16x128xf32>, vector<128x32xf32>, vector<16x32xf32> -> vector<16x32xf32>
    %c0_7 = arith.constant 0 : index
    %c0_8 = arith.constant 0 : index
    %9 = vector.load %arg7[%c0_7, %c0_8] : memref<1x32xf32, #tpu.memory_space<vmem>>, vector<1x32xf32>
    %10 = vector.broadcast %9 : vector<1x32xf32> to vector<16x32xf32>
    %11 = arith.addf %8, %10 : vector<16x32xf32>
    %cst_9 = arith.constant 0.000000e+00 : f32
    %12 = vector.broadcast %cst_9 : f32 to vector<16x32xf32>
    %13 = arith.maximumf %11, %12 : vector<16x32xf32>
    %c0_10 = arith.constant 0 : index
    %c0_11 = arith.constant 0 : index
    %14 = vector.load %arg2[%c0_10, %c0_11] : memref<16x32xf32, #tpu.memory_space<vmem>>, vector<16x32xf32>
    %15 = tpu.iota {dimensions = array<i32: 0>} : vector<8x8xi32>
    %16 = tpu.iota {dimensions = array<i32: 1>} : vector<8x8xi32>
    %17 = arith.cmpi sgt, %16, %15 : vector<8x8xi32>
    %18 = arith.extui %17 : vector<8x8xi1> to vector<8x8xi32>
    %19 = arith.sitofp %18 : vector<8x8xi32> to vector<8x8xf32>
    %c0_12 = arith.constant 0 : index
    %c0_13 = arith.constant 0 : index
    %c0_14 = arith.constant 0 : index
    %20 = vector.load %arg3[%c0_12, %c0_13, %c0_14] : memref<2x8x8xf32, #tpu.memory_space<vmem>>, vector<2x8x8xf32>
    %21 = vector.shape_cast %19 : vector<8x8xf32> to vector<1x8x8xf32>
    %22 = vector.broadcast %21 : vector<1x8x8xf32> to vector<2x8x8xf32>
    %23 = arith.mulf %20, %22 : vector<2x8x8xf32>
    %cst_15 = arith.constant 0.000000e+00 : f32
    %24 = vector.broadcast %cst_15 : f32 to vector<2x8x8xf32>
    %25 = arith.cmpf oeq, %23, %24 : vector<2x8x8xf32>
    %cst_16 = arith.constant -1.000000e+04 : f32
    %26 = vector.broadcast %cst_16 : f32 to vector<2x8x8xf32>
    %27 = arith.select %25, %26, %23 : vector<2x8x8xi1>, vector<2x8x8xf32>
    %cst_17 = arith.constant dense<0xFF800000> : vector<2x8xf32>
    %28 = vector.multi_reduction <maximumf>, %27, %cst_17 [2] : vector<2x8x8xf32> to vector<2x8xf32>
    %cst_18 = arith.constant 0xFF800000 : f32
    %29 = vector.broadcast %cst_18 : f32 to vector<2x8xf32>
    %30 = arith.maximumf %29, %28 : vector<2x8xf32>
    %31 = vector.shape_cast %30 : vector<2x8xf32> to vector<2x8x1xf32>
    %32 = vector.broadcast %31 : vector<2x8x1xf32> to vector<2x8x8xf32>
    %33 = arith.subf %27, %32 : vector<2x8x8xf32>
    %34 = math.exp %33 : vector<2x8x8xf32>
    %cst_19 = arith.constant dense<0.000000e+00> : vector<2x8xf32>
    %35 = vector.multi_reduction <add>, %34, %cst_19 [2] : vector<2x8x8xf32> to vector<2x8xf32>
    %36 = vector.shape_cast %35 : vector<2x8xf32> to vector<2x8x1xf32>
    %37 = vector.broadcast %36 : vector<2x8x1xf32> to vector<2x8x8xf32>
    %38 = arith.divf %34, %37 : vector<2x8x8xf32>
    %39 = vector.broadcast %0 : f32 to vector<2x8x8xf32>
    %40 = arith.mulf %39, %38 : vector<2x8x8xf32>
    %c0_20 = arith.constant 0 : index
    %c0_21 = arith.constant 0 : index
    %c0_22 = arith.constant 0 : index
    %41 = vector.load %arg4[%c0_20, %c0_21, %c0_22] : memref<2x8x8xf32, #tpu.memory_space<vmem>>, vector<2x8x8xf32>
    %42 = vector.shape_cast %19 : vector<8x8xf32> to vector<1x8x8xf32>
    %43 = vector.broadcast %42 : vector<1x8x8xf32> to vector<2x8x8xf32>
    %44 = arith.mulf %41, %43 : vector<2x8x8xf32>
    %cst_23 = arith.constant 0.000000e+00 : f32
    %45 = vector.broadcast %cst_23 : f32 to vector<2x8x8xf32>
    %46 = arith.cmpf oeq, %44, %45 : vector<2x8x8xf32>
    %cst_24 = arith.constant -1.000000e+04 : f32
    %47 = vector.broadcast %cst_24 : f32 to vector<2x8x8xf32>
    %48 = arith.select %46, %47, %44 : vector<2x8x8xi1>, vector<2x8x8xf32>
    %cst_25 = arith.constant dense<0xFF800000> : vector<2x8xf32>
    %49 = vector.multi_reduction <maximumf>, %48, %cst_25 [2] : vector<2x8x8xf32> to vector<2x8xf32>
    %cst_26 = arith.constant 0xFF800000 : f32
    %50 = vector.broadcast %cst_26 : f32 to vector<2x8xf32>
    %51 = arith.maximumf %50, %49 : vector<2x8xf32>
    %52 = vector.shape_cast %51 : vector<2x8xf32> to vector<2x8x1xf32>
    %53 = vector.broadcast %52 : vector<2x8x1xf32> to vector<2x8x8xf32>
    %54 = arith.subf %48, %53 : vector<2x8x8xf32>
    %55 = math.exp %54 : vector<2x8x8xf32>
    %cst_27 = arith.constant dense<0.000000e+00> : vector<2x8xf32>
    %56 = vector.multi_reduction <add>, %55, %cst_27 [2] : vector<2x8x8xf32> to vector<2x8xf32>
    %57 = vector.shape_cast %56 : vector<2x8xf32> to vector<2x8x1xf32>
    %58 = vector.broadcast %57 : vector<2x8x1xf32> to vector<2x8x8xf32>
    %59 = arith.divf %55, %58 : vector<2x8x8xf32>
    %60 = vector.broadcast %2 : f32 to vector<2x8x8xf32>
    %61 = arith.mulf %60, %59 : vector<2x8x8xf32>
    %62 = vector.shape_cast %17 : vector<8x8xi1> to vector<1x8x8xi1>
    %c0_28 = arith.constant 0 : index
    %c0_29 = arith.constant 0 : index
    %c0_30 = arith.constant 0 : index
    %63 = vector.load %arg5[%c0_28, %c0_29, %c0_30] : memref<2x8x8xf32, #tpu.memory_space<vmem>>, vector<2x8x8xf32>
    %64 = math.absf %63 : vector<2x8x8xf32>
    %cst_31 = arith.constant 0.000000e+00 : f32
    %65 = vector.broadcast %cst_31 : f32 to vector<2x8x8xf32>
    %66 = arith.subf %65, %64 : vector<2x8x8xf32>
    %67 = math.exp %66 : vector<2x8x8xf32>
    %cst_32 = arith.constant 0xFF800000 : f32
    %68 = vector.shape_cast %62 : vector<1x8x8xi1> to vector<1x8x8xi1>
    %69 = vector.broadcast %68 : vector<1x8x8xi1> to vector<2x8x8xi1>
    %70 = vector.broadcast %cst_32 : f32 to vector<2x8x8xf32>
    %71 = arith.select %69, %70, %67 : vector<2x8x8xi1>, vector<2x8x8xf32>
    %cst_33 = arith.constant dense<0xFF800000> : vector<2x8xf32>
    %72 = vector.multi_reduction <maximumf>, %71, %cst_33 [2] : vector<2x8x8xf32> to vector<2x8xf32>
    %cst_34 = arith.constant 0xFF800000 : f32
    %73 = vector.broadcast %cst_34 : f32 to vector<2x8xf32>
    %74 = arith.maximumf %73, %72 : vector<2x8xf32>
    %75 = vector.shape_cast %74 : vector<2x8xf32> to vector<2x8x1xf32>
    %76 = vector.broadcast %75 : vector<2x8x1xf32> to vector<2x8x8xf32>
    %77 = arith.subf %71, %76 : vector<2x8x8xf32>
    %78 = math.exp %77 : vector<2x8x8xf32>
    %cst_35 = arith.constant dense<0.000000e+00> : vector<2x8xf32>
    %79 = vector.multi_reduction <add>, %78, %cst_35 [2] : vector<2x8x8xf32> to vector<2x8xf32>
    %80 = vector.shape_cast %79 : vector<2x8xf32> to vector<2x8x1xf32>
    %81 = vector.broadcast %80 : vector<2x8x1xf32> to vector<2x8x8xf32>
    %82 = arith.divf %78, %81 : vector<2x8x8xf32>
    %83 = vector.broadcast %1 : f32 to vector<2x8x8xf32>
    %84 = arith.mulf %83, %82 : vector<2x8x8xf32>
    %c0_36 = arith.constant 0 : index
    %c0_37 = arith.constant 0 : index
    %c0_38 = arith.constant 0 : index
    %85 = vector.load %arg8[%c0_36, %c0_37, %c0_38] : memref<2x32x32xf32, #tpu.memory_space<vmem>>, vector<1x32x32xf32>
    %86 = vector.shape_cast %85 : vector<1x32x32xf32> to vector<32x32xf32>
    %cst_39 = arith.constant dense<0.000000e+00> : vector<16x32xf32>
    %87 = tpu.matmul %14, %86, %cst_39 {dimension_numbers = #tpu.dot_dimension_numbers<[1], [0], [0], [1], [0, 0, 1, 1], [], []>} : vector<16x32xf32>, vector<32x32xf32>, vector<16x32xf32> -> vector<16x32xf32>
    %c0_40 = arith.constant 0 : index
    %c0_41 = arith.constant 0 : index
    %c0_42 = arith.constant 0 : index
    %88 = vector.load %arg9[%c0_40, %c0_41, %c0_42] : memref<2x1x32xf32, #tpu.memory_space<vmem>>, vector<1x1x32xf32>
    %89 = vector.shape_cast %88 : vector<1x1x32xf32> to vector<1x32xf32>
    %90 = vector.broadcast %89 : vector<1x32xf32> to vector<16x32xf32>
    %91 = arith.addf %87, %90 : vector<16x32xf32>
    %c0_43 = arith.constant 0 : index
    %c0_44 = arith.constant 0 : index
    %c0_45 = arith.constant 0 : index
    %92 = vector.load %arg10[%c0_43, %c0_44, %c0_45] : memref<2x32x64xf32, #tpu.memory_space<vmem>>, vector<1x32x64xf32>
    %93 = vector.shape_cast %92 : vector<1x32x64xf32> to vector<32x64xf32>
    %cst_46 = arith.constant dense<0.000000e+00> : vector<16x64xf32>
    %94 = tpu.matmul %13, %93, %cst_46 {dimension_numbers = #tpu.dot_dimension_numbers<[1], [0], [0], [1], [0, 0, 1, 1], [], []>} : vector<16x32xf32>, vector<32x64xf32>, vector<16x64xf32> -> vector<16x64xf32>
    %c0_47 = arith.constant 0 : index
    %c0_48 = arith.constant 0 : index
    %c0_49 = arith.constant 0 : index
    %95 = vector.load %arg11[%c0_47, %c0_48, %c0_49] : memref<2x1x64xf32, #tpu.memory_space<vmem>>, vector<1x1x64xf32>
    %96 = vector.shape_cast %95 : vector<1x1x64xf32> to vector<1x64xf32>
    %97 = vector.broadcast %96 : vector<1x64xf32> to vector<16x64xf32>
    %98 = arith.addf %94, %97 : vector<16x64xf32>
    %99 = vector.shape_cast %91 : vector<16x32xf32> to vector<2x8x32xf32>
    %100 = vector.extract_strided_slice %98 {offsets = [0, 0], sizes = [16, 32], strides = [1, 1]} : vector<16x64xf32> to vector<16x32xf32>
    %101 = vector.shape_cast %100 : vector<16x32xf32> to vector<2x8x32xf32>
    %102 = vector.extract_strided_slice %98 {offsets = [0, 32], sizes = [16, 32], strides = [1, 1]} : vector<16x64xf32> to vector<16x32xf32>
    %103 = vector.shape_cast %102 : vector<16x32xf32> to vector<2x8x32xf32>
    %104 = vector.extract_strided_slice %99 {offsets = [0, 0, 0], sizes = [2, 8, 8], strides = [1, 1, 1]} : vector<2x8x32xf32> to vector<2x8x8xf32>
    %105 = vector.extract_strided_slice %101 {offsets = [0, 0, 0], sizes = [2, 8, 8], strides = [1, 1, 1]} : vector<2x8x32xf32> to vector<2x8x8xf32>
    %106 = vector.extract_strided_slice %103 {offsets = [0, 0, 0], sizes = [2, 8, 8], strides = [1, 1, 1]} : vector<2x8x32xf32> to vector<2x8x8xf32>
    "tpu.trace_start"() <{level = 10 : i32, message = "bqd,bkd->bqk"}> : () -> ()
    %cst_50 = arith.constant dense<0.000000e+00> : vector<2x8x8xf32>
    %107 = tpu.matmul %104, %105, %cst_50 {dimension_numbers = #tpu.dot_dimension_numbers<[2], [2], [1], [1], [0, 0, 0, 1, 1, 1], [0], [0]>} : vector<2x8x8xf32>, vector<2x8x8xf32>, vector<2x8x8xf32> -> vector<2x8x8xf32>
    "tpu.trace_stop"() : () -> ()
    %cst_51 = arith.constant 0.353553385 : f32
    %108 = vector.broadcast %cst_51 : f32 to vector<2x8x8xf32>
    %109 = arith.mulf %107, %108 : vector<2x8x8xf32>
    %110 = vector.shape_cast %17 : vector<8x8xi1> to vector<1x8x8xi1>
    %cst_52 = arith.constant -1.000000e+09 : f32
    %111 = vector.shape_cast %110 : vector<1x8x8xi1> to vector<1x8x8xi1>
    %112 = vector.broadcast %111 : vector<1x8x8xi1> to vector<2x8x8xi1>
    %113 = vector.broadcast %cst_52 : f32 to vector<2x8x8xf32>
    %114 = arith.select %112, %113, %109 : vector<2x8x8xi1>, vector<2x8x8xf32>
    %cst_53 = arith.constant dense<0xFF800000> : vector<2x8xf32>
    %115 = vector.multi_reduction <maximumf>, %114, %cst_53 [2] : vector<2x8x8xf32> to vector<2x8xf32>
    %cst_54 = arith.constant 0xFF800000 : f32
    %116 = vector.broadcast %cst_54 : f32 to vector<2x8xf32>
    %117 = arith.maximumf %116, %115 : vector<2x8xf32>
    %118 = vector.shape_cast %117 : vector<2x8xf32> to vector<2x8x1xf32>
    %119 = vector.broadcast %118 : vector<2x8x1xf32> to vector<2x8x8xf32>
    %120 = arith.subf %114, %119 : vector<2x8x8xf32>
    %121 = math.exp %120 : vector<2x8x8xf32>
    %cst_55 = arith.constant dense<0.000000e+00> : vector<2x8xf32>
    %122 = vector.multi_reduction <add>, %121, %cst_55 [2] : vector<2x8x8xf32> to vector<2x8xf32>
    %123 = vector.shape_cast %122 : vector<2x8xf32> to vector<2x8x1xf32>
    %124 = vector.broadcast %123 : vector<2x8x1xf32> to vector<2x8x8xf32>
    %125 = arith.divf %121, %124 : vector<2x8x8xf32>
    %126 = vector.broadcast %4 : f32 to vector<2x8x8xf32>
    %127 = arith.mulf %126, %125 : vector<2x8x8xf32>
    %128 = arith.addf %127, %84 : vector<2x8x8xf32>
    %129 = vector.broadcast %3 : f32 to vector<2x8x8xf32>
    %130 = arith.mulf %129, %128 : vector<2x8x8xf32>
    %131 = arith.addf %130, %40 : vector<2x8x8xf32>
    %132 = vector.broadcast %5 : f32 to vector<2x8x8xf32>
    %133 = arith.mulf %132, %131 : vector<2x8x8xf32>
    %134 = arith.addf %133, %61 : vector<2x8x8xf32>
    "tpu.trace_start"() <{level = 10 : i32, message = "bqk,bkd->bqd"}> : () -> ()
    %cst_56 = arith.constant dense<0.000000e+00> : vector<2x8x8xf32>
    %135 = tpu.matmul %134, %106, %cst_56 {dimension_numbers = #tpu.dot_dimension_numbers<[2], [1], [1], [2], [0, 0, 0, 1, 1, 2], [0], [0]>} : vector<2x8x8xf32>, vector<2x8x8xf32>, vector<2x8x8xf32> -> vector<2x8x8xf32>
    "tpu.trace_stop"() : () -> ()
    %136 = vector.extract_strided_slice %99 {offsets = [0, 0, 8], sizes = [2, 8, 8], strides = [1, 1, 1]} : vector<2x8x32xf32> to vector<2x8x8xf32>
    %137 = vector.extract_strided_slice %101 {offsets = [0, 0, 8], sizes = [2, 8, 8], strides = [1, 1, 1]} : vector<2x8x32xf32> to vector<2x8x8xf32>
    %138 = vector.extract_strided_slice %103 {offsets = [0, 0, 8], sizes = [2, 8, 8], strides = [1, 1, 1]} : vector<2x8x32xf32> to vector<2x8x8xf32>
    "tpu.trace_start"() <{level = 10 : i32, message = "bqd,bkd->bqk"}> : () -> ()
    %cst_57 = arith.constant dense<0.000000e+00> : vector<2x8x8xf32>
    %139 = tpu.matmul %136, %137, %cst_57 {dimension_numbers = #tpu.dot_dimension_numbers<[2], [2], [1], [1], [0, 0, 0, 1, 1, 1], [0], [0]>} : vector<2x8x8xf32>, vector<2x8x8xf32>, vector<2x8x8xf32> -> vector<2x8x8xf32>
    "tpu.trace_stop"() : () -> ()
    %cst_58 = arith.constant 0.353553385 : f32
    %140 = vector.broadcast %cst_58 : f32 to vector<2x8x8xf32>
    %141 = arith.mulf %139, %140 : vector<2x8x8xf32>
    %142 = vector.shape_cast %17 : vector<8x8xi1> to vector<1x8x8xi1>
    %cst_59 = arith.constant -1.000000e+09 : f32
    %143 = vector.shape_cast %142 : vector<1x8x8xi1> to vector<1x8x8xi1>
    %144 = vector.broadcast %143 : vector<1x8x8xi1> to vector<2x8x8xi1>
    %145 = vector.broadcast %cst_59 : f32 to vector<2x8x8xf32>
    %146 = arith.select %144, %145, %141 : vector<2x8x8xi1>, vector<2x8x8xf32>
    %cst_60 = arith.constant dense<0xFF800000> : vector<2x8xf32>
    %147 = vector.multi_reduction <maximumf>, %146, %cst_60 [2] : vector<2x8x8xf32> to vector<2x8xf32>
    %cst_61 = arith.constant 0xFF800000 : f32
    %148 = vector.broadcast %cst_61 : f32 to vector<2x8xf32>
    %149 = arith.maximumf %148, %147 : vector<2x8xf32>
    %150 = vector.shape_cast %149 : vector<2x8xf32> to vector<2x8x1xf32>
    %151 = vector.broadcast %150 : vector<2x8x1xf32> to vector<2x8x8xf32>
    %152 = arith.subf %146, %151 : vector<2x8x8xf32>
    %153 = math.exp %152 : vector<2x8x8xf32>
    %cst_62 = arith.constant dense<0.000000e+00> : vector<2x8xf32>
    %154 = vector.multi_reduction <add>, %153, %cst_62 [2] : vector<2x8x8xf32> to vector<2x8xf32>
    %155 = vector.shape_cast %154 : vector<2x8xf32> to vector<2x8x1xf32>
    %156 = vector.broadcast %155 : vector<2x8x1xf32> to vector<2x8x8xf32>
    %157 = arith.divf %153, %156 : vector<2x8x8xf32>
    %158 = vector.broadcast %4 : f32 to vector<2x8x8xf32>
    %159 = arith.mulf %158, %157 : vector<2x8x8xf32>
    %160 = arith.addf %159, %84 : vector<2x8x8xf32>
    %161 = vector.broadcast %3 : f32 to vector<2x8x8xf32>
    %162 = arith.mulf %161, %160 : vector<2x8x8xf32>
    %163 = arith.addf %162, %40 : vector<2x8x8xf32>
    %164 = vector.broadcast %5 : f32 to vector<2x8x8xf32>
    %165 = arith.mulf %164, %163 : vector<2x8x8xf32>
    %166 = arith.addf %165, %61 : vector<2x8x8xf32>
    "tpu.trace_start"() <{level = 10 : i32, message = "bqk,bkd->bqd"}> : () -> ()
    %cst_63 = arith.constant dense<0.000000e+00> : vector<2x8x8xf32>
    %167 = tpu.matmul %166, %138, %cst_63 {dimension_numbers = #tpu.dot_dimension_numbers<[2], [1], [1], [2], [0, 0, 0, 1, 1, 2], [0], [0]>} : vector<2x8x8xf32>, vector<2x8x8xf32>, vector<2x8x8xf32> -> vector<2x8x8xf32>
    "tpu.trace_stop"() : () -> ()
    %168 = vector.extract_strided_slice %99 {offsets = [0, 0, 16], sizes = [2, 8, 8], strides = [1, 1, 1]} : vector<2x8x32xf32> to vector<2x8x8xf32>
    %169 = vector.extract_strided_slice %101 {offsets = [0, 0, 16], sizes = [2, 8, 8], strides = [1, 1, 1]} : vector<2x8x32xf32> to vector<2x8x8xf32>
    %170 = vector.extract_strided_slice %103 {offsets = [0, 0, 16], sizes = [2, 8, 8], strides = [1, 1, 1]} : vector<2x8x32xf32> to vector<2x8x8xf32>
    "tpu.trace_start"() <{level = 10 : i32, message = "bqd,bkd->bqk"}> : () -> ()
    %cst_64 = arith.constant dense<0.000000e+00> : vector<2x8x8xf32>
    %171 = tpu.matmul %168, %169, %cst_64 {dimension_numbers = #tpu.dot_dimension_numbers<[2], [2], [1], [1], [0, 0, 0, 1, 1, 1], [0], [0]>} : vector<2x8x8xf32>, vector<2x8x8xf32>, vector<2x8x8xf32> -> vector<2x8x8xf32>
    "tpu.trace_stop"() : () -> ()
    %cst_65 = arith.constant 0.353553385 : f32
    %172 = vector.broadcast %cst_65 : f32 to vector<2x8x8xf32>
    %173 = arith.mulf %171, %172 : vector<2x8x8xf32>
    %174 = vector.shape_cast %17 : vector<8x8xi1> to vector<1x8x8xi1>
    %cst_66 = arith.constant -1.000000e+09 : f32
    %175 = vector.shape_cast %174 : vector<1x8x8xi1> to vector<1x8x8xi1>
    %176 = vector.broadcast %175 : vector<1x8x8xi1> to vector<2x8x8xi1>
    %177 = vector.broadcast %cst_66 : f32 to vector<2x8x8xf32>
    %178 = arith.select %176, %177, %173 : vector<2x8x8xi1>, vector<2x8x8xf32>
    %cst_67 = arith.constant dense<0xFF800000> : vector<2x8xf32>
    %179 = vector.multi_reduction <maximumf>, %178, %cst_67 [2] : vector<2x8x8xf32> to vector<2x8xf32>
    %cst_68 = arith.constant 0xFF800000 : f32
    %180 = vector.broadcast %cst_68 : f32 to vector<2x8xf32>
    %181 = arith.maximumf %180, %179 : vector<2x8xf32>
    %182 = vector.shape_cast %181 : vector<2x8xf32> to vector<2x8x1xf32>
    %183 = vector.broadcast %182 : vector<2x8x1xf32> to vector<2x8x8xf32>
    %184 = arith.subf %178, %183 : vector<2x8x8xf32>
    %185 = math.exp %184 : vector<2x8x8xf32>
    %cst_69 = arith.constant dense<0.000000e+00> : vector<2x8xf32>
    %186 = vector.multi_reduction <add>, %185, %cst_69 [2] : vector<2x8x8xf32> to vector<2x8xf32>
    %187 = vector.shape_cast %186 : vector<2x8xf32> to vector<2x8x1xf32>
    %188 = vector.broadcast %187 : vector<2x8x1xf32> to vector<2x8x8xf32>
    %189 = arith.divf %185, %188 : vector<2x8x8xf32>
    %190 = vector.broadcast %4 : f32 to vector<2x8x8xf32>
    %191 = arith.mulf %190, %189 : vector<2x8x8xf32>
    %192 = arith.addf %191, %84 : vector<2x8x8xf32>
    %193 = vector.broadcast %3 : f32 to vector<2x8x8xf32>
    %194 = arith.mulf %193, %192 : vector<2x8x8xf32>
    %195 = arith.addf %194, %40 : vector<2x8x8xf32>
    %196 = vector.broadcast %5 : f32 to vector<2x8x8xf32>
    %197 = arith.mulf %196, %195 : vector<2x8x8xf32>
    %198 = arith.addf %197, %61 : vector<2x8x8xf32>
    "tpu.trace_start"() <{level = 10 : i32, message = "bqk,bkd->bqd"}> : () -> ()
    %cst_70 = arith.constant dense<0.000000e+00> : vector<2x8x8xf32>
    %199 = tpu.matmul %198, %170, %cst_70 {dimension_numbers = #tpu.dot_dimension_numbers<[2], [1], [1], [2], [0, 0, 0, 1, 1, 2], [0], [0]>} : vector<2x8x8xf32>, vector<2x8x8xf32>, vector<2x8x8xf32> -> vector<2x8x8xf32>
    "tpu.trace_stop"() : () -> ()
    %200 = vector.extract_strided_slice %99 {offsets = [0, 0, 24], sizes = [2, 8, 8], strides = [1, 1, 1]} : vector<2x8x32xf32> to vector<2x8x8xf32>
    %201 = vector.extract_strided_slice %101 {offsets = [0, 0, 24], sizes = [2, 8, 8], strides = [1, 1, 1]} : vector<2x8x32xf32> to vector<2x8x8xf32>
    %202 = vector.extract_strided_slice %103 {offsets = [0, 0, 24], sizes = [2, 8, 8], strides = [1, 1, 1]} : vector<2x8x32xf32> to vector<2x8x8xf32>
    "tpu.trace_start"() <{level = 10 : i32, message = "bqd,bkd->bqk"}> : () -> ()
    %cst_71 = arith.constant dense<0.000000e+00> : vector<2x8x8xf32>
    %203 = tpu.matmul %200, %201, %cst_71 {dimension_numbers = #tpu.dot_dimension_numbers<[2], [2], [1], [1], [0, 0, 0, 1, 1, 1], [0], [0]>} : vector<2x8x8xf32>, vector<2x8x8xf32>, vector<2x8x8xf32> -> vector<2x8x8xf32>
    "tpu.trace_stop"() : () -> ()
    %cst_72 = arith.constant 0.353553385 : f32
    %204 = vector.broadcast %cst_72 : f32 to vector<2x8x8xf32>
    %205 = arith.mulf %203, %204 : vector<2x8x8xf32>
    %206 = vector.shape_cast %17 : vector<8x8xi1> to vector<1x8x8xi1>
    %cst_73 = arith.constant -1.000000e+09 : f32
    %207 = vector.shape_cast %206 : vector<1x8x8xi1> to vector<1x8x8xi1>
    %208 = vector.broadcast %207 : vector<1x8x8xi1> to vector<2x8x8xi1>
    %209 = vector.broadcast %cst_73 : f32 to vector<2x8x8xf32>
    %210 = arith.select %208, %209, %205 : vector<2x8x8xi1>, vector<2x8x8xf32>
    %cst_74 = arith.constant dense<0xFF800000> : vector<2x8xf32>
    %211 = vector.multi_reduction <maximumf>, %210, %cst_74 [2] : vector<2x8x8xf32> to vector<2x8xf32>
    %cst_75 = arith.constant 0xFF800000 : f32
    %212 = vector.broadcast %cst_75 : f32 to vector<2x8xf32>
    %213 = arith.maximumf %212, %211 : vector<2x8xf32>
    %214 = vector.shape_cast %213 : vector<2x8xf32> to vector<2x8x1xf32>
    %215 = vector.broadcast %214 : vector<2x8x1xf32> to vector<2x8x8xf32>
    %216 = arith.subf %210, %215 : vector<2x8x8xf32>
    %217 = math.exp %216 : vector<2x8x8xf32>
    %cst_76 = arith.constant dense<0.000000e+00> : vector<2x8xf32>
    %218 = vector.multi_reduction <add>, %217, %cst_76 [2] : vector<2x8x8xf32> to vector<2x8xf32>
    %219 = vector.shape_cast %218 : vector<2x8xf32> to vector<2x8x1xf32>
    %220 = vector.broadcast %219 : vector<2x8x1xf32> to vector<2x8x8xf32>
    %221 = arith.divf %217, %220 : vector<2x8x8xf32>
    %222 = vector.broadcast %4 : f32 to vector<2x8x8xf32>
    %223 = arith.mulf %222, %221 : vector<2x8x8xf32>
    %224 = arith.addf %223, %84 : vector<2x8x8xf32>
    %225 = vector.broadcast %3 : f32 to vector<2x8x8xf32>
    %226 = arith.mulf %225, %224 : vector<2x8x8xf32>
    %227 = arith.addf %226, %40 : vector<2x8x8xf32>
    %228 = vector.broadcast %5 : f32 to vector<2x8x8xf32>
    %229 = arith.mulf %228, %227 : vector<2x8x8xf32>
    %230 = arith.addf %229, %61 : vector<2x8x8xf32>
    "tpu.trace_start"() <{level = 10 : i32, message = "bqk,bkd->bqd"}> : () -> ()
    %cst_77 = arith.constant dense<0.000000e+00> : vector<2x8x8xf32>
    %231 = tpu.matmul %230, %202, %cst_77 {dimension_numbers = #tpu.dot_dimension_numbers<[2], [1], [1], [2], [0, 0, 0, 1, 1, 2], [0], [0]>} : vector<2x8x8xf32>, vector<2x8x8xf32>, vector<2x8x8xf32> -> vector<2x8x8xf32>
    "tpu.trace_stop"() : () -> ()
    %232 = tpu.concatenate %135, %167, %199, %231 in 2 : vector<2x8x8xf32>, vector<2x8x8xf32>, vector<2x8x8xf32>, vector<2x8x8xf32> -> vector<2x8x32xf32>
    %233 = vector.shape_cast %232 : vector<2x8x32xf32> to vector<16x32xf32>
    %c1_78 = arith.constant 1 : index
    %c0_79 = arith.constant 0 : index
    %c0_80 = arith.constant 0 : index
    %234 = vector.load %arg8[%c1_78, %c0_79, %c0_80] : memref<2x32x32xf32, #tpu.memory_space<vmem>>, vector<1x32x32xf32>
    %235 = vector.shape_cast %234 : vector<1x32x32xf32> to vector<32x32xf32>
    %cst_81 = arith.constant dense<0.000000e+00> : vector<16x32xf32>
    %236 = tpu.matmul %14, %235, %cst_81 {dimension_numbers = #tpu.dot_dimension_numbers<[1], [0], [0], [1], [0, 0, 1, 1], [], []>} : vector<16x32xf32>, vector<32x32xf32>, vector<16x32xf32> -> vector<16x32xf32>
    %c1_82 = arith.constant 1 : index
    %c0_83 = arith.constant 0 : index
    %c0_84 = arith.constant 0 : index
    %237 = vector.load %arg9[%c1_82, %c0_83, %c0_84] : memref<2x1x32xf32, #tpu.memory_space<vmem>>, vector<1x1x32xf32>
    %238 = vector.shape_cast %237 : vector<1x1x32xf32> to vector<1x32xf32>
    %239 = vector.broadcast %238 : vector<1x32xf32> to vector<16x32xf32>
    %240 = arith.addf %236, %239 : vector<16x32xf32>
    %c1_85 = arith.constant 1 : index
    %c0_86 = arith.constant 0 : index
    %c0_87 = arith.constant 0 : index
    %241 = vector.load %arg10[%c1_85, %c0_86, %c0_87] : memref<2x32x64xf32, #tpu.memory_space<vmem>>, vector<1x32x64xf32>
    %242 = vector.shape_cast %241 : vector<1x32x64xf32> to vector<32x64xf32>
    %cst_88 = arith.constant dense<0.000000e+00> : vector<16x64xf32>
    %243 = tpu.matmul %233, %242, %cst_88 {dimension_numbers = #tpu.dot_dimension_numbers<[1], [0], [0], [1], [0, 0, 1, 1], [], []>} : vector<16x32xf32>, vector<32x64xf32>, vector<16x64xf32> -> vector<16x64xf32>
    %c1_89 = arith.constant 1 : index
    %c0_90 = arith.constant 0 : index
    %c0_91 = arith.constant 0 : index
    %244 = vector.load %arg11[%c1_89, %c0_90, %c0_91] : memref<2x1x64xf32, #tpu.memory_space<vmem>>, vector<1x1x64xf32>
    %245 = vector.shape_cast %244 : vector<1x1x64xf32> to vector<1x64xf32>
    %246 = vector.broadcast %245 : vector<1x64xf32> to vector<16x64xf32>
    %247 = arith.addf %243, %246 : vector<16x64xf32>
    %248 = vector.shape_cast %240 : vector<16x32xf32> to vector<2x8x32xf32>
    %249 = vector.extract_strided_slice %247 {offsets = [0, 0], sizes = [16, 32], strides = [1, 1]} : vector<16x64xf32> to vector<16x32xf32>
    %250 = vector.shape_cast %249 : vector<16x32xf32> to vector<2x8x32xf32>
    %251 = vector.extract_strided_slice %247 {offsets = [0, 32], sizes = [16, 32], strides = [1, 1]} : vector<16x64xf32> to vector<16x32xf32>
    %252 = vector.shape_cast %251 : vector<16x32xf32> to vector<2x8x32xf32>
    %253 = vector.extract_strided_slice %248 {offsets = [0, 0, 0], sizes = [2, 8, 8], strides = [1, 1, 1]} : vector<2x8x32xf32> to vector<2x8x8xf32>
    %254 = vector.extract_strided_slice %250 {offsets = [0, 0, 0], sizes = [2, 8, 8], strides = [1, 1, 1]} : vector<2x8x32xf32> to vector<2x8x8xf32>
    %255 = vector.extract_strided_slice %252 {offsets = [0, 0, 0], sizes = [2, 8, 8], strides = [1, 1, 1]} : vector<2x8x32xf32> to vector<2x8x8xf32>
    "tpu.trace_start"() <{level = 10 : i32, message = "bqd,bkd->bqk"}> : () -> ()
    %cst_92 = arith.constant dense<0.000000e+00> : vector<2x8x8xf32>
    %256 = tpu.matmul %253, %254, %cst_92 {dimension_numbers = #tpu.dot_dimension_numbers<[2], [2], [1], [1], [0, 0, 0, 1, 1, 1], [0], [0]>} : vector<2x8x8xf32>, vector<2x8x8xf32>, vector<2x8x8xf32> -> vector<2x8x8xf32>
    "tpu.trace_stop"() : () -> ()
    %cst_93 = arith.constant 0.353553385 : f32
    %257 = vector.broadcast %cst_93 : f32 to vector<2x8x8xf32>
    %258 = arith.mulf %256, %257 : vector<2x8x8xf32>
    %259 = vector.shape_cast %17 : vector<8x8xi1> to vector<1x8x8xi1>
    %cst_94 = arith.constant -1.000000e+09 : f32
    %260 = vector.shape_cast %259 : vector<1x8x8xi1> to vector<1x8x8xi1>
    %261 = vector.broadcast %260 : vector<1x8x8xi1> to vector<2x8x8xi1>
    %262 = vector.broadcast %cst_94 : f32 to vector<2x8x8xf32>
    %263 = arith.select %261, %262, %258 : vector<2x8x8xi1>, vector<2x8x8xf32>
    %cst_95 = arith.constant dense<0xFF800000> : vector<2x8xf32>
    %264 = vector.multi_reduction <maximumf>, %263, %cst_95 [2] : vector<2x8x8xf32> to vector<2x8xf32>
    %cst_96 = arith.constant 0xFF800000 : f32
    %265 = vector.broadcast %cst_96 : f32 to vector<2x8xf32>
    %266 = arith.maximumf %265, %264 : vector<2x8xf32>
    %267 = vector.shape_cast %266 : vector<2x8xf32> to vector<2x8x1xf32>
    %268 = vector.broadcast %267 : vector<2x8x1xf32> to vector<2x8x8xf32>
    %269 = arith.subf %263, %268 : vector<2x8x8xf32>
    %270 = math.exp %269 : vector<2x8x8xf32>
    %cst_97 = arith.constant dense<0.000000e+00> : vector<2x8xf32>
    %271 = vector.multi_reduction <add>, %270, %cst_97 [2] : vector<2x8x8xf32> to vector<2x8xf32>
    %272 = vector.shape_cast %271 : vector<2x8xf32> to vector<2x8x1xf32>
    %273 = vector.broadcast %272 : vector<2x8x1xf32> to vector<2x8x8xf32>
    %274 = arith.divf %270, %273 : vector<2x8x8xf32>
    %275 = vector.broadcast %4 : f32 to vector<2x8x8xf32>
    %276 = arith.mulf %275, %274 : vector<2x8x8xf32>
    %277 = arith.addf %276, %84 : vector<2x8x8xf32>
    %278 = vector.broadcast %3 : f32 to vector<2x8x8xf32>
    %279 = arith.mulf %278, %277 : vector<2x8x8xf32>
    %280 = arith.addf %279, %40 : vector<2x8x8xf32>
    %281 = vector.broadcast %5 : f32 to vector<2x8x8xf32>
    %282 = arith.mulf %281, %280 : vector<2x8x8xf32>
    %283 = arith.addf %282, %61 : vector<2x8x8xf32>
    "tpu.trace_start"() <{level = 10 : i32, message = "bqk,bkd->bqd"}> : () -> ()
    %cst_98 = arith.constant dense<0.000000e+00> : vector<2x8x8xf32>
    %284 = tpu.matmul %283, %255, %cst_98 {dimension_numbers = #tpu.dot_dimension_numbers<[2], [1], [1], [2], [0, 0, 0, 1, 1, 2], [0], [0]>} : vector<2x8x8xf32>, vector<2x8x8xf32>, vector<2x8x8xf32> -> vector<2x8x8xf32>
    "tpu.trace_stop"() : () -> ()
    %c0_99 = arith.constant 0 : index
    %c0_100 = arith.constant 0 : index
    %c0_101 = arith.constant 0 : index
    %c0_102 = arith.constant 0 : index
    %285 = vector.load %arg18[%c0_99, %c0_100, %c0_101, %c0_102] : memref<4x2x8x8xf32, #tpu.memory_space<vmem>>, vector<1x2x8x8xf32>
    %286 = vector.shape_cast %285 : vector<1x2x8x8xf32> to vector<2x8x8xf32>
    %287 = vector.shape_cast %283 : vector<2x8x8xf32> to vector<1x2x8x8xf32>
    tpu.vector_store %arg18[%c0_99, %c0_100, %c0_101, %c0_102], %287 {strides = array<i32>} : memref<4x2x8x8xf32, #tpu.memory_space<vmem>>, vector<1x2x8x8xf32>,
    %288 = vector.extract_strided_slice %248 {offsets = [0, 0, 8], sizes = [2, 8, 8], strides = [1, 1, 1]} : vector<2x8x32xf32> to vector<2x8x8xf32>
    %289 = vector.extract_strided_slice %250 {offsets = [0, 0, 8], sizes = [2, 8, 8], strides = [1, 1, 1]} : vector<2x8x32xf32> to vector<2x8x8xf32>
    %290 = vector.extract_strided_slice %252 {offsets = [0, 0, 8], sizes = [2, 8, 8], strides = [1, 1, 1]} : vector<2x8x32xf32> to vector<2x8x8xf32>
    "tpu.trace_start"() <{level = 10 : i32, message = "bqd,bkd->bqk"}> : () -> ()
    %cst_103 = arith.constant dense<0.000000e+00> : vector<2x8x8xf32>
    %291 = tpu.matmul %288, %289, %cst_103 {dimension_numbers = #tpu.dot_dimension_numbers<[2], [2], [1], [1], [0, 0, 0, 1, 1, 1], [0], [0]>} : vector<2x8x8xf32>, vector<2x8x8xf32>, vector<2x8x8xf32> -> vector<2x8x8xf32>
    "tpu.trace_stop"() : () -> ()
    %cst_104 = arith.constant 0.353553385 : f32
    %292 = vector.broadcast %cst_104 : f32 to vector<2x8x8xf32>
    %293 = arith.mulf %291, %292 : vector<2x8x8xf32>
    %294 = vector.shape_cast %17 : vector<8x8xi1> to vector<1x8x8xi1>
    %cst_105 = arith.constant -1.000000e+09 : f32
    %295 = vector.shape_cast %294 : vector<1x8x8xi1> to vector<1x8x8xi1>
    %296 = vector.broadcast %295 : vector<1x8x8xi1> to vector<2x8x8xi1>
    %297 = vector.broadcast %cst_105 : f32 to vector<2x8x8xf32>
    %298 = arith.select %296, %297, %293 : vector<2x8x8xi1>, vector<2x8x8xf32>
    %cst_106 = arith.constant dense<0xFF800000> : vector<2x8xf32>
    %299 = vector.multi_reduction <maximumf>, %298, %cst_106 [2] : vector<2x8x8xf32> to vector<2x8xf32>
    %cst_107 = arith.constant 0xFF800000 : f32
    %300 = vector.broadcast %cst_107 : f32 to vector<2x8xf32>
    %301 = arith.maximumf %300, %299 : vector<2x8xf32>
    %302 = vector.shape_cast %301 : vector<2x8xf32> to vector<2x8x1xf32>
    %303 = vector.broadcast %302 : vector<2x8x1xf32> to vector<2x8x8xf32>
    %304 = arith.subf %298, %303 : vector<2x8x8xf32>
    %305 = math.exp %304 : vector<2x8x8xf32>
    %cst_108 = arith.constant dense<0.000000e+00> : vector<2x8xf32>
    %306 = vector.multi_reduction <add>, %305, %cst_108 [2] : vector<2x8x8xf32> to vector<2x8xf32>
    %307 = vector.shape_cast %306 : vector<2x8xf32> to vector<2x8x1xf32>
    %308 = vector.broadcast %307 : vector<2x8x1xf32> to vector<2x8x8xf32>
    %309 = arith.divf %305, %308 : vector<2x8x8xf32>
    %310 = vector.broadcast %4 : f32 to vector<2x8x8xf32>
    %311 = arith.mulf %310, %309 : vector<2x8x8xf32>
    %312 = arith.addf %311, %84 : vector<2x8x8xf32>
    %313 = vector.broadcast %3 : f32 to vector<2x8x8xf32>
    %314 = arith.mulf %313, %312 : vector<2x8x8xf32>
    %315 = arith.addf %314, %40 : vector<2x8x8xf32>
    %316 = vector.broadcast %5 : f32 to vector<2x8x8xf32>
    %317 = arith.mulf %316, %315 : vector<2x8x8xf32>
    %318 = arith.addf %317, %61 : vector<2x8x8xf32>
    "tpu.trace_start"() <{level = 10 : i32, message = "bqk,bkd->bqd"}> : () -> ()
    %cst_109 = arith.constant dense<0.000000e+00> : vector<2x8x8xf32>
    %319 = tpu.matmul %318, %290, %cst_109 {dimension_numbers = #tpu.dot_dimension_numbers<[2], [1], [1], [2], [0, 0, 0, 1, 1, 2], [0], [0]>} : vector<2x8x8xf32>, vector<2x8x8xf32>, vector<2x8x8xf32> -> vector<2x8x8xf32>
    "tpu.trace_stop"() : () -> ()
    %c1_110 = arith.constant 1 : index
    %c0_111 = arith.constant 0 : index
    %c0_112 = arith.constant 0 : index
    %c0_113 = arith.constant 0 : index
    %320 = vector.load %arg18[%c1_110, %c0_111, %c0_112, %c0_113] : memref<4x2x8x8xf32, #tpu.memory_space<vmem>>, vector<1x2x8x8xf32>
    %321 = vector.shape_cast %320 : vector<1x2x8x8xf32> to vector<2x8x8xf32>
    %322 = vector.shape_cast %318 : vector<2x8x8xf32> to vector<1x2x8x8xf32>
    tpu.vector_store %arg18[%c1_110, %c0_111, %c0_112, %c0_113], %322 {strides = array<i32>} : memref<4x2x8x8xf32, #tpu.memory_space<vmem>>, vector<1x2x8x8xf32>,
    %323 = vector.extract_strided_slice %248 {offsets = [0, 0, 16], sizes = [2, 8, 8], strides = [1, 1, 1]} : vector<2x8x32xf32> to vector<2x8x8xf32>
    %324 = vector.extract_strided_slice %250 {offsets = [0, 0, 16], sizes = [2, 8, 8], strides = [1, 1, 1]} : vector<2x8x32xf32> to vector<2x8x8xf32>
    %325 = vector.extract_strided_slice %252 {offsets = [0, 0, 16], sizes = [2, 8, 8], strides = [1, 1, 1]} : vector<2x8x32xf32> to vector<2x8x8xf32>
    "tpu.trace_start"() <{level = 10 : i32, message = "bqd,bkd->bqk"}> : () -> ()
    %cst_114 = arith.constant dense<0.000000e+00> : vector<2x8x8xf32>
    %326 = tpu.matmul %323, %324, %cst_114 {dimension_numbers = #tpu.dot_dimension_numbers<[2], [2], [1], [1], [0, 0, 0, 1, 1, 1], [0], [0]>} : vector<2x8x8xf32>, vector<2x8x8xf32>, vector<2x8x8xf32> -> vector<2x8x8xf32>
    "tpu.trace_stop"() : () -> ()
    %cst_115 = arith.constant 0.353553385 : f32
    %327 = vector.broadcast %cst_115 : f32 to vector<2x8x8xf32>
    %328 = arith.mulf %326, %327 : vector<2x8x8xf32>
    %329 = vector.shape_cast %17 : vector<8x8xi1> to vector<1x8x8xi1>
    %cst_116 = arith.constant -1.000000e+09 : f32
    %330 = vector.shape_cast %329 : vector<1x8x8xi1> to vector<1x8x8xi1>
    %331 = vector.broadcast %330 : vector<1x8x8xi1> to vector<2x8x8xi1>
    %332 = vector.broadcast %cst_116 : f32 to vector<2x8x8xf32>
    %333 = arith.select %331, %332, %328 : vector<2x8x8xi1>, vector<2x8x8xf32>
    %cst_117 = arith.constant dense<0xFF800000> : vector<2x8xf32>
    %334 = vector.multi_reduction <maximumf>, %333, %cst_117 [2] : vector<2x8x8xf32> to vector<2x8xf32>
    %cst_118 = arith.constant 0xFF800000 : f32
    %335 = vector.broadcast %cst_118 : f32 to vector<2x8xf32>
    %336 = arith.maximumf %335, %334 : vector<2x8xf32>
    %337 = vector.shape_cast %336 : vector<2x8xf32> to vector<2x8x1xf32>
    %338 = vector.broadcast %337 : vector<2x8x1xf32> to vector<2x8x8xf32>
    %339 = arith.subf %333, %338 : vector<2x8x8xf32>
    %340 = math.exp %339 : vector<2x8x8xf32>
    %cst_119 = arith.constant dense<0.000000e+00> : vector<2x8xf32>
    %341 = vector.multi_reduction <add>, %340, %cst_119 [2] : vector<2x8x8xf32> to vector<2x8xf32>
    %342 = vector.shape_cast %341 : vector<2x8xf32> to vector<2x8x1xf32>
    %343 = vector.broadcast %342 : vector<2x8x1xf32> to vector<2x8x8xf32>
    %344 = arith.divf %340, %343 : vector<2x8x8xf32>
    %345 = vector.broadcast %4 : f32 to vector<2x8x8xf32>
    %346 = arith.mulf %345, %344 : vector<2x8x8xf32>
    %347 = arith.addf %346, %84 : vector<2x8x8xf32>
    %348 = vector.broadcast %3 : f32 to vector<2x8x8xf32>
    %349 = arith.mulf %348, %347 : vector<2x8x8xf32>
    %350 = arith.addf %349, %40 : vector<2x8x8xf32>
    %351 = vector.broadcast %5 : f32 to vector<2x8x8xf32>
    %352 = arith.mulf %351, %350 : vector<2x8x8xf32>
    %353 = arith.addf %352, %61 : vector<2x8x8xf32>
    "tpu.trace_start"() <{level = 10 : i32, message = "bqk,bkd->bqd"}> : () -> ()
    %cst_120 = arith.constant dense<0.000000e+00> : vector<2x8x8xf32>
    %354 = tpu.matmul %353, %325, %cst_120 {dimension_numbers = #tpu.dot_dimension_numbers<[2], [1], [1], [2], [0, 0, 0, 1, 1, 2], [0], [0]>} : vector<2x8x8xf32>, vector<2x8x8xf32>, vector<2x8x8xf32> -> vector<2x8x8xf32>
    "tpu.trace_stop"() : () -> ()
    %c2_121 = arith.constant 2 : index
    %c0_122 = arith.constant 0 : index
    %c0_123 = arith.constant 0 : index
    %c0_124 = arith.constant 0 : index
    %355 = vector.load %arg18[%c2_121, %c0_122, %c0_123, %c0_124] : memref<4x2x8x8xf32, #tpu.memory_space<vmem>>, vector<1x2x8x8xf32>
    %356 = vector.shape_cast %355 : vector<1x2x8x8xf32> to vector<2x8x8xf32>
    %357 = vector.shape_cast %353 : vector<2x8x8xf32> to vector<1x2x8x8xf32>
    tpu.vector_store %arg18[%c2_121, %c0_122, %c0_123, %c0_124], %357 {strides = array<i32>} : memref<4x2x8x8xf32, #tpu.memory_space<vmem>>, vector<1x2x8x8xf32>,
    %358 = vector.extract_strided_slice %248 {offsets = [0, 0, 24], sizes = [2, 8, 8], strides = [1, 1, 1]} : vector<2x8x32xf32> to vector<2x8x8xf32>
    %359 = vector.extract_strided_slice %250 {offsets = [0, 0, 24], sizes = [2, 8, 8], strides = [1, 1, 1]} : vector<2x8x32xf32> to vector<2x8x8xf32>
    %360 = vector.extract_strided_slice %252 {offsets = [0, 0, 24], sizes = [2, 8, 8], strides = [1, 1, 1]} : vector<2x8x32xf32> to vector<2x8x8xf32>
    "tpu.trace_start"() <{level = 10 : i32, message = "bqd,bkd->bqk"}> : () -> ()
    %cst_125 = arith.constant dense<0.000000e+00> : vector<2x8x8xf32>
    %361 = tpu.matmul %358, %359, %cst_125 {dimension_numbers = #tpu.dot_dimension_numbers<[2], [2], [1], [1], [0, 0, 0, 1, 1, 1], [0], [0]>} : vector<2x8x8xf32>, vector<2x8x8xf32>, vector<2x8x8xf32> -> vector<2x8x8xf32>
    "tpu.trace_stop"() : () -> ()
    %cst_126 = arith.constant 0.353553385 : f32
    %362 = vector.broadcast %cst_126 : f32 to vector<2x8x8xf32>
    %363 = arith.mulf %361, %362 : vector<2x8x8xf32>
    %364 = vector.shape_cast %17 : vector<8x8xi1> to vector<1x8x8xi1>
    %cst_127 = arith.constant -1.000000e+09 : f32
    %365 = vector.shape_cast %364 : vector<1x8x8xi1> to vector<1x8x8xi1>
    %366 = vector.broadcast %365 : vector<1x8x8xi1> to vector<2x8x8xi1>
    %367 = vector.broadcast %cst_127 : f32 to vector<2x8x8xf32>
    %368 = arith.select %366, %367, %363 : vector<2x8x8xi1>, vector<2x8x8xf32>
    %cst_128 = arith.constant dense<0xFF800000> : vector<2x8xf32>
    %369 = vector.multi_reduction <maximumf>, %368, %cst_128 [2] : vector<2x8x8xf32> to vector<2x8xf32>
    %cst_129 = arith.constant 0xFF800000 : f32
    %370 = vector.broadcast %cst_129 : f32 to vector<2x8xf32>
    %371 = arith.maximumf %370, %369 : vector<2x8xf32>
    %372 = vector.shape_cast %371 : vector<2x8xf32> to vector<2x8x1xf32>
    %373 = vector.broadcast %372 : vector<2x8x1xf32> to vector<2x8x8xf32>
    %374 = arith.subf %368, %373 : vector<2x8x8xf32>
    %375 = math.exp %374 : vector<2x8x8xf32>
    %cst_130 = arith.constant dense<0.000000e+00> : vector<2x8xf32>
    %376 = vector.multi_reduction <add>, %375, %cst_130 [2] : vector<2x8x8xf32> to vector<2x8xf32>
    %377 = vector.shape_cast %376 : vector<2x8xf32> to vector<2x8x1xf32>
    %378 = vector.broadcast %377 : vector<2x8x1xf32> to vector<2x8x8xf32>
    %379 = arith.divf %375, %378 : vector<2x8x8xf32>
    %380 = vector.broadcast %4 : f32 to vector<2x8x8xf32>
    %381 = arith.mulf %380, %379 : vector<2x8x8xf32>
    %382 = arith.addf %381, %84 : vector<2x8x8xf32>
    %383 = vector.broadcast %3 : f32 to vector<2x8x8xf32>
    %384 = arith.mulf %383, %382 : vector<2x8x8xf32>
    %385 = arith.addf %384, %40 : vector<2x8x8xf32>
    %386 = vector.broadcast %5 : f32 to vector<2x8x8xf32>
    %387 = arith.mulf %386, %385 : vector<2x8x8xf32>
    %388 = arith.addf %387, %61 : vector<2x8x8xf32>
    "tpu.trace_start"() <{level = 10 : i32, message = "bqk,bkd->bqd"}> : () -> ()
    %cst_131 = arith.constant dense<0.000000e+00> : vector<2x8x8xf32>
    %389 = tpu.matmul %388, %360, %cst_131 {dimension_numbers = #tpu.dot_dimension_numbers<[2], [1], [1], [2], [0, 0, 0, 1, 1, 2], [0], [0]>} : vector<2x8x8xf32>, vector<2x8x8xf32>, vector<2x8x8xf32> -> vector<2x8x8xf32>
    "tpu.trace_stop"() : () -> ()
    %c3 = arith.constant 3 : index
    %c0_132 = arith.constant 0 : index
    %c0_133 = arith.constant 0 : index
    %c0_134 = arith.constant 0 : index
    %390 = vector.load %arg18[%c3, %c0_132, %c0_133, %c0_134] : memref<4x2x8x8xf32, #tpu.memory_space<vmem>>, vector<1x2x8x8xf32>
    %391 = vector.shape_cast %390 : vector<1x2x8x8xf32> to vector<2x8x8xf32>
    %392 = vector.shape_cast %388 : vector<2x8x8xf32> to vector<1x2x8x8xf32>
    tpu.vector_store %arg18[%c3, %c0_132, %c0_133, %c0_134], %392 {strides = array<i32>} : memref<4x2x8x8xf32, #tpu.memory_space<vmem>>, vector<1x2x8x8xf32>,
    %393 = tpu.concatenate %284, %319, %354, %389 in 2 : vector<2x8x8xf32>, vector<2x8x8xf32>, vector<2x8x8xf32>, vector<2x8x8xf32> -> vector<2x8x32xf32>
    %cst_135 = arith.constant 0.000000e+00 : f32
    %394 = vector.broadcast %cst_135 : f32 to vector<2x8x32xf32>
    %395 = arith.maximumf %393, %394 : vector<2x8x32xf32>
    %396 = arith.addf %232, %395 : vector<2x8x32xf32>
    %397 = vector.shape_cast %396 : vector<2x8x32xf32> to vector<16x32xf32>
    %c0_136 = arith.constant 0 : index
    %c0_137 = arith.constant 0 : index
    %398 = vector.load %arg12[%c0_136, %c0_137] : memref<32x32xf32, #tpu.memory_space<vmem>>, vector<32x32xf32>
    %cst_138 = arith.constant dense<0.000000e+00> : vector<16x32xf32>
    %399 = tpu.matmul %397, %398, %cst_138 {dimension_numbers = #tpu.dot_dimension_numbers<[1], [0], [0], [1], [0, 0, 1, 1], [], []>} : vector<16x32xf32>, vector<32x32xf32>, vector<16x32xf32> -> vector<16x32xf32>
    %c0_139 = arith.constant 0 : index
    %c0_140 = arith.constant 0 : index
    %400 = vector.load %arg13[%c0_139, %c0_140] : memref<32x32xf32, #tpu.memory_space<vmem>>, vector<32x32xf32>
    %cst_141 = arith.constant dense<0.000000e+00> : vector<16x32xf32>
    %401 = tpu.matmul %14, %400, %cst_141 {dimension_numbers = #tpu.dot_dimension_numbers<[1], [0], [0], [1], [0, 0, 1, 1], [], []>} : vector<16x32xf32>, vector<32x32xf32>, vector<16x32xf32> -> vector<16x32xf32>
    %402 = arith.addf %399, %401 : vector<16x32xf32>
    %c0_142 = arith.constant 0 : index
    %c0_143 = arith.constant 0 : index
    %403 = vector.load %arg14[%c0_142, %c0_143] : memref<1x32xf32, #tpu.memory_space<vmem>>, vector<1x32xf32>
    %404 = vector.broadcast %403 : vector<1x32xf32> to vector<16x32xf32>
    %405 = arith.addf %402, %404 : vector<16x32xf32>
    %cst_144 = arith.constant 0.000000e+00 : f32
    %406 = vector.broadcast %cst_144 : f32 to vector<16x32xf32>
    %407 = arith.maximumf %405, %406 : vector<16x32xf32>
    %c0_145 = arith.constant 0 : index
    %c0_146 = arith.constant 0 : index
    %408 = vector.load %arg15[%c0_145, %c0_146] : memref<32x1xf32, #tpu.memory_space<vmem>>, vector<32x1xf32>
    %cst_147 = arith.constant dense<0.000000e+00> : vector<16x1xf32>
    %409 = tpu.matmul %407, %408, %cst_147 {dimension_numbers = #tpu.dot_dimension_numbers<[1], [0], [0], [1], [0, 0, 1, 1], [], []>} : vector<16x32xf32>, vector<32x1xf32>, vector<16x1xf32> -> vector<16x1xf32>
    %c0_148 = arith.constant 0 : index
    %c0_149 = arith.constant 0 : index
    %410 = vector.load %arg16[%c0_148, %c0_149] : memref<1x1xf32, #tpu.memory_space<vmem>>, vector<1x1xf32>
    %411 = vector.broadcast %410 : vector<1x1xf32> to vector<16x1xf32>
    %412 = arith.addf %409, %411 : vector<16x1xf32>
    %c0_150 = arith.constant 0 : index
    %c0_151 = arith.constant 0 : index
    %413 = vector.load %arg17[%c0_150, %c0_151] : memref<16x1xf32, #tpu.memory_space<vmem>>, vector<16x1xf32>
    tpu.vector_store %arg17[%c0_150, %c0_151], %412 {strides = array<i32>} : memref<16x1xf32, #tpu.memory_space<vmem>>, vector<16x1xf32>,
    return
  }
}

</mosaic_0001>

<bundles_post_ra>
// kernel: srl_kt_forward.1
= control target key start
LH: loop header
LB: loop body
LE: loop exit
PB: predicated region body
PF: predicated region fallthrough
CT: control target
= control target key end

     0   :  { %s3255_s0 = inlined_call_operand.vmem [shape: f32[3], index: 0, kind: input, shape index: {}]   ;;  %s3256_s1 = inlined_call_operand.vmem [shape: f32[16,128], index: 1, kind: input, shape index: {}]   ;;  %s3257_s2 = inlined_call_operand.vmem [shape: f32[16,32], index: 2, kind: input, shape index: {}]   ;;  %s3258_s3 = inlined_call_operand.vmem [shape: f32[2,8,8], index: 3, kind: input, shape index: {}]   ;;  %s3259_s4 = inlined_call_operand.vmem [shape: f32[2,8,8], index: 4, kind: input, shape index: {}]   ;;  %s3260_s5 = inlined_call_operand.vmem [shape: f32[2,8,8], index: 5, kind: input, shape index: {}]   ;;  %s3261_s6 = inlined_call_operand.vmem [shape: f32[128,32], index: 6, kind: input, shape index: {}]   ;;  %s3262_s7 = inlined_call_operand.vmem [shape: f32[1,32], index: 7, kind: input, shape index: {}]   ;;  %s3263_s8 = inlined_call_operand.vmem [shape: f32[2,32,32], index: 8, kind: input, shape index: {}]   ;;  %s3264_s9 = inlined_call_operand.vmem [shape: f32[2,1,32], index: 9, kind: input, shape index: {}]   ;;  %s3265_s10 = inlined_call_operand.vmem [shape: f32[2,32,64], index: 10, kind: input, shape index: {}]   ;;  %s3266_s11 = inlined_call_operand.vmem [shape: f32[2,1,64], index: 11, kind: input, shape index: {}]   ;;  %s3267_s12 = inlined_call_operand.vmem [shape: f32[32,32], index: 12, kind: input, shape index: {}]   ;;  %s3268_s13 = inlined_call_operand.vmem [shape: f32[32,32], index: 13, kind: input, shape index: {}]   ;;  %s3269_s14 = inlined_call_operand.vmem [shape: f32[1,32], index: 14, kind: input, shape index: {}]   ;;  %s3270_s15 = inlined_call_operand.vmem [shape: f32[32,1], index: 15, kind: input, shape index: {}]   ;;  %s3271_s16 = inlined_call_operand.<no memory space> [shape: f32[1,1], index: 16, kind: input, shape index: {}]   ;;  %s3272_s17 = inlined_call_operand.vmem [shape: f32[16,1], index: 17, kind: output, shape index: {0}]   ;;  %s3273_s18 = inlined_call_operand.vmem [shape: f32[4,2,8,8], index: 18, kind: output, shape index: {1}]  }
   0x1   :  { %3276 = sst [smem:[#allocation6_spill]] %s3255_s0  ;;  %v24_v0 = vstv %s3271_s16 }
   0x2   :  { %3277 = sst [smem:[#allocation7_spill]] %s3256_s1  ;;  %25 = vst [vmem:[#allocation2] sm:$0x1] %v24_v0 }
   0x3   :  { %3278 = sst [smem:[#allocation8_spill]] %s3257_s2 }
   0x4   :  { %26 = vsyncpa [#allocation4], 0  ;;  %s3279_s0 = sld [smem:[#allocation6_spill]]  ;;  %s2243_s1 = smov [#allocation3]  }
   0xa   :  { %s32_s19 = sshll.u32 %s3279_s0, 4  ;;  %s33_s19 = int_to_ptr.vmem [resolvable:$true] %s32_s19 }
   0xb   :  { %35 = dma.vmem_to_smem %s33_s19, 16, %s2243_s1, [#allocation4]  }
   0xc   :  { %2241 = dma.done.wait [#allocation4], 16  }
   0xd   :  { %2242 = vsyncadd [#allocation4], 4294967280 }
   0xe   :  { %72 = sfence }
   0xf   :  { %v96_v1 = vld [vmem:[%s3261_s6 + $0x78] sm:$0xff]  ;;  %v95_v2 = vld [vmem:[%s3261_s6 + $0x70] sm:$0xff]  ;;  %v94_v3 = vld [vmem:[%s3261_s6 + $0x68] sm:$0xff]  ;;  %s3280_s16 = sld [smem:[#allocation7_spill]]  ;;  %vm326_vm0 = vcmask 261120   ;;  %v128_v36 = vlaneseq  ;;  %v2244_v46 = vmov 0.0  }
  0x10   :  { %101 = vmatpush.msra.mxu0 %v96_v1  ;;  %v93_v4 = vld [vmem:[%s3261_s6 + $0x60] sm:$0xff]  ;;  %v92_v5 = vld [vmem:[%s3261_s6 + $0x58] sm:$0xff]  ;;  %v91_v6 = vld [vmem:[%s3261_s6 + $0x50] sm:$0xff]  ;;  %s3281_s24 = sld [smem:[#allocation8_spill]]  ;;  %vm143_vm3 = vcmask 64512   ;;  %s2245_s2 = smov 120  }
  0x11   :  { %v359_v7 = vld [vmem:[%s3265_s10 + $0x18] sm:$0xff]  ;;  %v90_v8 = vld [vmem:[%s3261_s6 + $0x48] sm:$0xff]  ;;  %v89_v9 = vld [vmem:[%s3261_s6 + $0x40] sm:$0xff]  ;;  %v129_v39 = vshrl.u32 %v128_v36, 7  ;;  %v131_v40 = vand.u32 127, %v128_v36  ;;  %s2248_s27 = smov 96  }
  0x12   :  { %102 = vmatpush.msra.mxu0 %v95_v2  ;;  %382 = vmatpush.msra.mxu2 %v359_v7  ;;  %v88_v10 = vld [vmem:[%s3261_s6 + $0x38] sm:$0xff]  ;;  %v87_v11 = vld [vmem:[%s3261_s6 + $0x30] sm:$0xff]  ;;  %v86_v12 = vld [vmem:[%s3261_s6 + $0x28] sm:$0xff]  ;;  %s2603_s29 = sld [smem:[#allocation3 + $0x1]]  ;;  %s2250_s20 = smov 80  }
  0x13   :  { %v85_v13 = vld [vmem:[%s3261_s6 + $0x20] sm:$0xff]  ;;  %v84_v14 = vld [vmem:[%s3261_s6 + $0x18] sm:$0xff]  ;;  %v83_v15 = vld [vmem:[%s3261_s6 + $0x10] sm:$0xff]  ;;  %vm2456_vm1 = vcmp.gt.s32.totalorder %v131_v40, %v129_v39  ;;  %s2709_s19 = sld [smem:[#allocation3 + $0x2]]  ;;  %s2251_s21 = smov 72  }
  0x14   :  { %103 = vmatpush.msra.mxu0 %v94_v3  ;;  %v82_v16 = vld [vmem:[%s3261_s6 + $0x8] sm:$0xff]  ;;  %v81_v17 = vld [vmem:[%s3261_s6] sm:$0xff]  ;;  %v358_v20 = vld [vmem:[%s3265_s10 + $0x10] sm:$0xff]  ;;  %v2462_v47 = vsel %vm2456_vm1, 1.0, %v2244_v46  ;;  %s2252_s22 = smov 8   ;;  %s2254_s23 = smov 24  }
  0x15   :  { %v79_v18 = vld [vmem:[%s3280_s16] sm:$0xff]  ;;  %v80_v19 = vld [vmem:[%s3280_s16 + $0x8] sm:$0xff]  ;;  %383 = vmatpush.msra.mxu2 %v358_v20  ;;  %v321_v23 = vld [vmem:[%s3263_s8 + $0x18] sm:$0xff]  ;;  %s2253_s16 = smov 16  }
  0x16   :  { %104 = vmatpush.msra.mxu0 %v93_v4  ;;  %v357_v21 = vld [vmem:[%s3265_s10 + $0x8] sm:$0xff]  ;;  %v356_v22 = vld [vmem:[%s3265_s10] sm:$0xff]  ;;  %345 = vmatpush.msra.mxu1 %v321_v23  ;;  %v320_v24 = vld [vmem:[%s3263_s8 + $0x10] sm:$0xff] }
  0x17   :  { %384 = vmatpush.msra.mxu2 %v357_v21  ;;  %v319_v25 = vld [vmem:[%s3263_s8 + $0x8] sm:$0xff]  ;;  %v318_v26 = vld [vmem:[%s3263_s8] sm:$0xff] }
  0x18   :  { %105 = vmatpush.msra.mxu0 %v92_v5  ;;  %346 = vmatpush.msra.mxu1 %v320_v24  ;;  %v126_v27 = vld [vmem:[%s3281_s24] sm:$0xff]  ;;  %v127_v28 = vld [vmem:[%s3281_s24 + $0x8] sm:$0xff]  ;;  %s77_s30 = ssub.f32 1.0, %s2603_s29 }
  0x19   :  { %385 = vmatpush.msra.mxu2 %v356_v22  ;;  %v2128_v29 = vld [vmem:[%s3262_s7] ss:$0 sm:$0xff]  ;;  %v255_v37 = vld [vmem:[%s3260_s5 + $0x8] sm:$0xff]  ;;  %s2616_s7 = sld [smem:[#allocation3]] }
  0x1a   :  { %106 = vmatpush.msra.mxu0 %v91_v6  ;;  %347 = vmatpush.msra.mxu1 %v319_v25  ;;  %v257_v38 = vand.u32 2147483647, %v255_v37  ;;  %v136_v42 = vld [vmem:[%s3258_s3 + $0x8] sm:$0xff]  ;;  %v2129_v55 = vld [vmem:[%s3266_s11] ss:$0 sm:$0xff]  ;;  %s78_s1 = ssub.f32 1.0, %s2709_s19 }
  0x1b   :  { %v196_v43 = vld [vmem:[%s3259_s4 + $0x8] sm:$0xff]  ;;  %v138_v48 = vmul.f32 %v2462_v47, %v136_v42  ;;  %v2130_v58 = vld [vmem:[%s3264_s9] ss:$0 sm:$0xff] }
  0x1c   :  { %107 = vmatpush.msra.mxu0 %v90_v8  ;;  %348 = vmatpush.msra.mxu1 %v318_v26  ;;  %v259_v41 = vsub.f32 0.0, %v257_v38  ;;  %v198_v49 = vmul.f32 %v2462_v47, %v196_v43  ;;  %v135_v3 = vld [vmem:[%s3258_s3] sm:$0xff]  ;;  %s2246_s3 = smov 88  }
  0x1d   :  { %2033 = vmatmul.msk.f32.vlgmr.msra.gmra.mxu1 %vm326_vm0, %v126_v27  ;;  %vm140_vm2 = vcmp.eq.f32.partialorder %v138_v48, 0.0  ;;  %v137_v4 = vmul.f32 %v2462_v47, %v135_v3  ;;  %v254_v5 = vld [vmem:[%s3260_s5] sm:$0xff]  ;;  %s2247_s5 = smov 112  }
  0x1e   :  { %108 = vmatpush.msra.mxu0 %v89_v9  ;;  %v262_v45 = vmul.f32 1.442695, %v259_v41  ;;  %v142_v50 = vsel %vm140_vm2, -10000.0, %v138_v48  ;;  %vm200_vm4 = vcmp.eq.f32.partialorder %v198_v49, 0.0  ;;  %v256_v7 = vand.u32 2147483647, %v254_v5 }
  0x1f   :  { %v147_v51 = vsel %vm143_vm3, %v142_v50, -inf  ;;  %v2467_v53 = vsel %vm200_vm4, -10000.0, %v198_v49  ;;  %vm139_vm5 = vcmp.eq.f32.partialorder %v137_v4, 0.0  ;;  %v195_v46 = vld [vmem:[%s3259_s4] sm:$0xff]  ;;  %s2249_s4 = smov 104   ;;  %s76_s0 = ssub.f32 1.0, %s2616_s7 }
  0x20   :  { %109 = vmatpush.msra.mxu0 %v88_v10  ;;  %2135 = vpow2.f32 %v262_v45  ;;  %148 = vmax.xlane.f32.xlu2 %v147_v51  ;;  %v206_v59 = vsel %vm143_vm3, %v2467_v53, -inf  ;;  %v141_v6 = vsel %vm139_vm5, -10000.0, %v137_v4  ;;  %v258_v9 = vsub.f32 0.0, %v256_v7 }
  0x21   :  { %v144_v8 = vsel %vm143_vm3, %v141_v6, -inf  ;;  %v197_v49 = vmul.f32 %v2462_v47, %v195_v46 }
  0x22   :  { %110 = vmatpush.msra.mxu0 %v87_v11  ;;  %v260_v10 = vmul.f32 1.442695, %v258_v9 }
  0x23   :  { %vm199_vm6 = vcmp.eq.f32.partialorder %v197_v49, 0.0 }
  0x24   :  { %111 = vmatpush.msra.mxu0 %v86_v12  ;;  %2137 = vpow2.f32 %v260_v10 }
  0x25   :  { %2034 = vmatmul.msk.f32.gmra.mxu1 %vm326_vm0, %v127_v28 }
  0x26   :  { %112 = vmatpush.msra.mxu0 %v85_v13  ;;  %v2136_v52 = vpop.eup %2135 }
  0x27   :  { %v266_v54 = vsel %vm2456_vm1, -inf, %v2136_v52 }
  0x28   :  { %113 = vmatpush.msra.mxu0 %v84_v14  ;;  %v270_v57 = vsel %vm143_vm3, %v266_v54, -inf  ;;  %207 = vmax.xlane.f32.xlu2 %v206_v59 }
  0x29   :  { %271 = vmax.xlane.f32.xlu1 %v270_v57 }
  0x2a   :  { %114 = vmatpush.msra.mxu0 %v83_v15  ;;  %v2138_v11 = vpop.eup %2137 }
  0x2b   :  { %v265_v12 = vsel %vm2456_vm1, -inf, %v2138_v11 }
  0x2c   :  { %115 = vmatpush.msra.mxu0 %v82_v16  ;;  %v267_v13 = vsel %vm143_vm3, %v265_v12, -inf }
  0x2e   :  { %116 = vmatpush.msra.mxu0 %v81_v17 }
  0x2f   :  { %117 = vmatmul.f32.vlgmr.msra.gmra.mxu0 %v79_v18 }
  0x30   :  { %145 = vmax.xlane.f32.xlu2 %v144_v8 }
  0x37   :  { %120 = vmatmul.f32.gmra.mxu0 %v80_v19 }
  0x93   :  { %v149_v17 = vpop.xlane.xlu2 %148 }
  0x94   :  { %v151_v19 = vsub.f32 %v142_v50, %v149_v17 }
  0x96   :  { %v154_v21 = vmul.f32 1.442695, %v151_v19 }
  0x9a   :  { %v350_v56 = vpop.f32.mrf.mxu1 }
  0x9b   :  { %v2482_v62 = vadd.f32 %v2130_v58, %v350_v56  ;;  %v201_v56 = vsel %vm199_vm6, -10000.0, %v197_v49 }
  0x9c   :  { %v272_v15 = vpop.xlane.xlu1 %271  ;;  %v203_v57 = vsel %vm143_vm3, %v201_v56, -inf }
  0x9d   :  { %v274_v16 = vsub.f32 %v266_v54, %v272_v15 }
  0x9f   :  { %v277_v18 = vmul.f32 1.442695, %v274_v16 }
  0xa1   :  { %2139 = vpow2.f32 %v277_v18 }
  0xa2   :  { %v353_v63 = vpop.f32.mrf.mxu1  ;;  %2141 = vpow2.f32 %v154_v21 }
  0xa3   :  { %v2492_v2 = vadd.f32 %v2130_v58, %v353_v63 }
  0xa7   :  { %v2517_v22 = vpop.eup %2139 }
  0xa8   :  { %v282_v23 = vsel %vm143_vm3, %v2517_v22, 0.0  ;;  %v2521_v24 = vpop.eup %2141 }
  0xa9   :  { %283 = vadd.xlane.f32.xlu2 %v282_v23  ;;  %v159_v26 = vsel %vm143_vm3, %v2521_v24, 0.0 }
  0xac   :  { %v118_v30 = vpop.f32.mrf.mxu0 }
  0xad   :  { %v119_v31 = vadd.f32 %v2128_v29, %v118_v30 }
  0xaf   :  { %v124_v32 = vmax.f32 %v119_v31, 0.0  ;;  %v208_v31 = vpop.xlane.xlu2 %207 }
  0xb0   :  { %v210_v50 = vsub.f32 %v2467_v53, %v208_v31 }
  0xb1   :  { %2035 = vmatmul.msk.f32.vlgmr.msra.gmra.mxu2 %vm326_vm0, %v124_v32  ;;  %160 = vadd.xlane.f32.xlu2 %v159_v26 }
  0xb4   :  { %v121_v33 = vpop.f32.mrf.mxu0 }
  0xb5   :  { %v122_v34 = vadd.f32 %v2128_v29, %v121_v33 }
  0xb7   :  { %v125_v35 = vmax.f32 %v122_v34, 0.0  ;;  %v146_v32 = vpop.xlane.xlu2 %145 }
  0xb9   :  { %2036 = vmatmul.msk.f32.gmra.mxu2 %vm326_vm0, %v125_v35  ;;  %v150_v35 = vsub.f32 %v141_v6, %v146_v32 }
  0xbb   :  { %v152_v37 = vmul.f32 1.442695, %v150_v35 }
 0x11c   :  { %v2554_v53 = vpop.xlane.xlu2 %283 }
 0x11d   :  { %vm305_vm7 = vweird.f32 %v2554_v53 }
 0x124   :  { %v2560_v59 = vpop.xlane.xlu2 %160 }
 0x125   :  { %vm182_vm10 = vweird.f32 %v2560_v59  ;;  %v186_v49 = vand.u32 2147483647, %v2560_v59 }
 0x127   :  { %vm187_vm14 = vcmp.eq.f32.partialorder %v186_v49, 8.507059e+37 }
 0x134   :  { %v387_v60 = vpop.f32.mrf.mxu2 }
 0x135   :  { %v2480_v61 = vadd.f32 %v2129_v55, %v387_v60 }
 0x137   :  { %566 = vrot.lane.b32.xlu0 %v2480_v61, %s2245_s2  ;;  %2037 = vmatpush.xpose.msk.msra.mxu3 %vm143_vm3, %v2480_v61 }
 0x13a   :  { %2038 = vmatmul.msk.f32.vlgmr.msra.gmra.mxu3 %vm143_vm3, %v2482_v62 }
 0x13c   :  { %v390_v0 = vpop.f32.mrf.mxu2 }
 0x13d   :  { %v2490_v1 = vadd.f32 %v2129_v55, %v390_v0  ;;  %v213_v55 = vmul.f32 1.442695, %v210_v50  ;;  %v188_v50 = vand.u32 2147483648, %v2560_v59 }
 0x13f   :  { %564 = vrot.lane.b32.xlu0 %v2482_v62, %s2245_s2  ;;  %2039 = vmatpush.xpose.msk.msrb.mxu3 %vm143_vm3, %v2490_v1 }
 0x142   :  { %2040 = vmatmul.msk.f32.vlgmr.msrb.gmra.mxu3 %vm143_vm3, %v2492_v2 }
 0x169   :  { %268 = vmax.xlane.f32.xlu0 %v267_v13 }
 0x17d   :  { %684 = vrot.lane.b32.xlu0 %v2480_v61, %s2246_s3 }
 0x185   :  { %764 = vrot.lane.b32.xlu0 %v2492_v2, %s2247_s5 }
 0x1a9   :  { %v567_v14 = vpop.permute.xlu0 %566 }
 0x1aa   :  { %2043 = vmatpush.xpose.msk.msrb.mxu2 %vm143_vm3, %v567_v14 }
 0x1b1   :  { %v565_v20 = vpop.permute.xlu0 %564 }
 0x1b2   :  { %2044 = vmatmul.msk.f32.vlgmr.msrb.gmra.mxu2 %vm143_vm3, %v565_v20 }
 0x1bd   :  { %v416_v25 = vpop.f32.mrf.mxu3 }
 0x1be   :  { %v445_v42 = vmul.f32 0.35355338, %v416_v25 }
 0x1c0   :  { %v447_v43 = vsel %vm2456_vm1, -1e+09, %v445_v42 }
 0x1c1   :  { %v449_v45 = vsel %vm143_vm3, %v447_v43, -inf }
 0x1c5   :  { %v442_v27 = vpop.f32.mrf.mxu3 }
 0x1c6   :  { %v446_v28 = vmul.f32 0.35355338, %v442_v27 }
 0x1c8   :  { %v448_v29 = vsel %vm2456_vm1, -1e+09, %v446_v28 }
 0x1c9   :  { %v452_v30 = vsel %vm143_vm3, %v448_v29, -inf }
 0x1ca   :  { %453 = vmax.xlane.f32.xlu1 %v452_v30 }
 0x1dc   :  { %v269_v33 = vpop.xlane.xlu0 %268 }
 0x1dd   :  { %v273_v34 = vsub.f32 %v265_v12, %v269_v33 }
 0x1df   :  { %v275_v36 = vmul.f32 1.442695, %v273_v34 }
 0x1e1   :  { %2143 = vpow2.f32 %v275_v36  ;;  %v309_v36 = vand.u32 2147483647, %v2554_v53 }
 0x1e2   :  { %2145 = vpow2.f32 %v152_v37  ;;  %v311_v37 = vand.u32 2147483648, %v2554_v53 }
 0x1e3   :  { %2147 = vpow2.f32 %v213_v55  ;;  %vm2619_vm12 = vcmp.eq.f32.partialorder %v309_v36, 8.507059e+37 }
 0x1e7   :  { %v2528_v38 = vpop.eup %2143 }
 0x1e8   :  { %v279_v39 = vsel %vm143_vm3, %v2528_v38, 0.0  ;;  %v2532_v40 = vpop.eup %2145 }
 0x1e9   :  { %280 = vadd.xlane.f32.xlu2 %v279_v39  ;;  %v156_v41 = vsel %vm143_vm3, %v2532_v40, 0.0  ;;  %v2550_v58 = vpop.eup %2147 }
 0x1ea   :  { %v218_v47 = vsel %vm143_vm3, %v2550_v58, 0.0 }
 0x1ef   :  { %v685_v3 = vpop.permute.xlu0 %684 }
 0x1f1   :  { %157 = vadd.xlane.f32.xlu2 %v156_v41 }
 0x209   :  { %538 = vrot.lane.b32.xlu2 %v2490_v1, %s2248_s27 }
 0x232   :  { %450 = vmax.xlane.f32.xlu2 %v449_v45 }
 0x235   :  { %v589_v48 = vpop.f32.mrf.mxu2 }
 0x236   :  { %v620_v51 = vmul.f32 0.35355338, %v589_v48 }
 0x238   :  { %v622_v52 = vsel %vm2456_vm1, -1e+09, %v620_v51  ;;  %v312_v51 = vor.u32 1.1754944e-38, %v311_v37 }
 0x239   :  { %v624_v54 = vsel %vm143_vm3, %v622_v52, -inf }
 0x23a   :  { %625 = vmax.xlane.f32.xlu1 %v624_v54 }
 0x23d   :  { %v454_v4 = vpop.xlane.xlu1 %453 }
 0x23e   :  { %v456_v8 = vsub.f32 %v448_v29, %v454_v4 }
 0x240   :  { %v459_v10 = vmul.f32 1.442695, %v456_v8 }
 0x242   :  { %204 = vmax.xlane.f32.xlu1 %v203_v57 }
 0x24a   :  { %594 = vrot.lane.b32.xlu2 %v2490_v1, %s2245_s2  ;;  %219 = vadd.xlane.f32.xlu1 %v218_v47 }
 0x252   :  { %736 = vrot.lane.b32.xlu2 %v2482_v62, %s2247_s5 }
 0x25c   :  { %v2562_v60 = vpop.xlane.xlu2 %280 }
 0x25d   :  { %v294_v4 = vand.u32 2147483647, %v2562_v60  ;;  %vm290_vm15 = vweird.f32 %v2562_v60 }
 0x25f   :  { %vm2657_vm4 = vcmp.eq.f32.partialorder %v294_v4, 8.507059e+37 }
 0x264   :  { %v2564_v63 = vpop.xlane.xlu2 %157 }
 0x265   :  { %vm167_vm5 = vweird.f32 %v2564_v63 }
 0x26c   :  { %v539_v0 = vpop.permute.xlu2 %538 }
 0x26d   :  { %559 = vmatpush.msrb.mxu1 %v539_v0 }
 0x26f   :  { %705 = vmatpush.msra.mxu1 %v685_v3 }
 0x2a5   :  { %v451_v19 = vpop.xlane.xlu2 %450 }
 0x2a6   :  { %v455_v20 = vsub.f32 %v447_v43, %v451_v19 }
 0x2a8   :  { %v457_v21 = vmul.f32 1.442695, %v455_v20 }
 0x2ad   :  { %v626_v5 = vpop.xlane.xlu1 %625 }
 0x2ae   :  { %v630_v12 = vsub.f32 %v622_v52, %v626_v5 }
 0x2b0   :  { %v632_v14 = vmul.f32 1.442695, %v630_v12 }
 0x2b5   :  { %v205_v6 = vpop.xlane.xlu1 %204 }
 0x2b6   :  { %v209_v7 = vsub.f32 %v201_v56, %v205_v6 }
 0x2b8   :  { %v211_v9 = vmul.f32 1.442695, %v209_v7 }
 0x2ba   :  { %2149 = vpow2.f32 %v211_v9  ;;  %v315_v9 = vstv %s2603_s29 }
 0x2bb   :  { %2151 = vpow2.f32 %v459_v10  ;;  %v2651_v10 = vstv %s77_s30 }
 0x2bc   :  { %2153 = vpow2.f32 %v632_v14 }
 0x2bd   :  { %2155 = vpow2.f32 %v457_v21  ;;  %v2586_v27 = vpop.xlane.xlu1 %219 }
 0x2be   :  { %2157 = vrcp.f32 %v2554_v53 }
 0x2bf   :  { %2159 = vrcp.f32 %v2560_v59 }
 0x2c0   :  { %v2566_v11 = vpop.eup %2149  ;;  %2161 = vrcp.f32 %v2562_v60 }
 0x2c1   :  { %v215_v13 = vsel %vm143_vm3, %v2566_v11, 0.0  ;;  %v2570_v15 = vpop.eup %2151  ;;  %2163 = vrcp.f32 %v2586_v27 }
 0x2c2   :  { %216 = vadd.xlane.f32.xlu1 %v215_v13  ;;  %v464_v16 = vsel %vm143_vm3, %v2570_v15, 0.0  ;;  %v2574_v17 = vpop.eup %2153  ;;  %2165 = vrcp.f32 %v2564_v63 }
 0x2c3   :  { %v636_v18 = vsel %vm143_vm3, %v2574_v17, 0.0  ;;  %v2580_v23 = vpop.eup %2155 }
 0x2c4   :  { %v461_v25 = vsel %vm143_vm3, %v2580_v23, 0.0  ;;  %v2158_v26 = vpop.eup %2157 }
 0x2c5   :  { %v2160_v28 = vpop.eup %2159  ;;  %v301_v29 = vmul.f32 %v2158_v26, %v2554_v53  ;;  %vm306_vm8 = vweird.f32 %v2158_v26 }
 0x2c6   :  { %v178_v30 = vmul.f32 %v2160_v28, %v2560_v59  ;;  %v2599_v35 = vpop.eup %2161  ;;  %vm2612_vm9 = vmor %vm305_vm7, %vm306_vm8  ;;  %vm183_vm11 = vweird.f32 %v2160_v28  ;;  %v189_v59 = vor.u32 1.1754944e-38, %v188_v50  ;;  %vm241_vm7 = vweird.f32 %v2586_v27 }
 0x2c7   :  { %v302_v31 = vsub.f32 1.0, %v301_v29  ;;  %v2606_v41 = vpop.eup %2163  ;;  %v286_v43 = vmul.f32 %v2599_v35, %v2562_v60  ;;  %vm2632_vm13 = vmor %vm182_vm10, %vm183_vm11  ;;  %vm291_vm2 = vweird.f32 %v2599_v35  ;;  %v245_v29 = vand.u32 2147483647, %v2586_v27 }
 0x2c8   :  { %v179_v32 = vsub.f32 1.0, %v178_v30  ;;  %v2610_v45 = vpop.eup %2165  ;;  %v237_v54 = vmul.f32 %v2606_v41, %v2586_v27  ;;  %vm2670_vm6 = vmor %vm290_vm15, %vm291_vm2  ;;  %vm242_vm8 = vweird.f32 %v2606_v41  ;;  %v247_v30 = vand.u32 2147483648, %v2586_v27 }
 0x2c9   :  { %v303_v34 = vmul.f32 %v2158_v26, %v302_v31  ;;  %v287_v47 = vsub.f32 1.0, %v286_v43  ;;  %v163_v53 = vmul.f32 %v2610_v45, %v2564_v63  ;;  %v173_v43 = vand.u32 2147483648, %v2564_v63  ;;  %vm2693_vm11 = vmor %vm241_vm7, %vm242_vm8 }
 0x2ca   :  { %465 = vadd.xlane.f32.xlu1 %v464_v16  ;;  %v180_v39 = vmul.f32 %v2160_v28, %v179_v32  ;;  %v238_v5 = vsub.f32 1.0, %v237_v54  ;;  %v248_v54 = vor.u32 1.1754944e-38, %v247_v30  ;;  %v251_v30 = vstv %s2709_s19 }
 0x2cb   :  { %v304_v42 = vadd.f32 %v2158_v26, %v303_v34  ;;  %v288_v6 = vmul.f32 %v2599_v35, %v287_v47  ;;  %v164_v7 = vsub.f32 1.0, %v163_v53  ;;  %v174_v53 = vor.u32 1.1754944e-38, %v173_v43 }
 0x2cc   :  { %v181_v52 = vadd.f32 %v2160_v28, %v180_v39  ;;  %v239_v19 = vmul.f32 %v2606_v41, %v238_v5 }
 0x2cd   :  { %v308_v56 = vsel %vm2612_vm9, %v2158_v26, %v304_v42  ;;  %vm168_vm9 = vweird.f32 %v2610_v45  ;;  %v171_v42 = vand.u32 2147483647, %v2564_v63 }
 0x2ce   :  { %v313_v0 = vsel %vm2619_vm12, %v312_v51, %v308_v56  ;;  %v185_v3 = vsel %vm2632_vm13, %v2160_v28, %v181_v52  ;;  %v240_v32 = vadd.f32 %v2606_v41, %v239_v19  ;;  %vm2703_vm12 = vmor %vm167_vm5, %vm168_vm9 }
 0x2cf   :  { %v314_v13 = vmul.f32 %v2517_v22, %v313_v0  ;;  %v190_v14 = vsel %vm187_vm14, %v189_v59, %v185_v3  ;;  %v165_v22 = vmul.f32 %v2610_v45, %v164_v7  ;;  %vm2711_vm14 = vcmp.eq.f32.partialorder %v245_v29, 8.507059e+37 }
 0x2d0   :  { %v191_v51 = vmul.f32 %v2521_v24, %v190_v14  ;;  %v244_v56 = vsel %vm2693_vm11, %v2606_v41, %v240_v32  ;;  %vm2722_vm5 = vcmp.eq.f32.partialorder %v171_v42, 8.507059e+37 }
 0x2d1   :  { %v166_v48 = vadd.f32 %v2610_v45, %v165_v22  ;;  %v2733_v5 = vmul.f32 %v315_v9, %v314_v13  ;;  %v249_v7 = vsel %vm2711_vm14, %v248_v54, %v244_v56 }
 0x2d2   :  { %637 = vadd.xlane.f32.xlu1 %v636_v18  ;;  %v296_v18 = vand.u32 2147483648, %v2562_v60  ;;  %v250_v22 = vmul.f32 %v2550_v58, %v249_v7 }
 0x2d3   :  { %v170_v0 = vsel %vm2703_vm12, %v2610_v45, %v166_v48 }
 0x2d4   :  { %v297_v39 = vor.u32 1.1754944e-38, %v296_v18  ;;  %v175_v13 = vsel %vm2722_vm5, %v174_v53, %v170_v0 }
 0x2eb   :  { %766 = vrot.lane.b32.xlu1 %v2490_v1, %s2247_s5 }
 0x315   :  { %462 = vadd.xlane.f32.xlu1 %v461_v25  ;;  %v289_v25 = vadd.f32 %v2599_v35, %v288_v6  ;;  %v2735_v6 = vstv %s76_s0 }
 0x317   :  { %v293_v37 = vsel %vm2670_vm6, %v2599_v35, %v289_v25 }
 0x318   :  { %v298_v24 = vsel %vm2657_vm4, %v297_v39, %v293_v37  ;;  %v2772_v39 = vmul.f32 %v251_v30, %v250_v22 }
 0x32e   :  { %592 = vrot.lane.b32.xlu1 %v2492_v2, %s2245_s2 }
 0x335   :  { %v2595_v33 = vpop.xlane.xlu1 %216 }
 0x336   :  { %910 = vrot.lane.b32.xlu1 %v2480_v61, %s2249_s4  ;;  %2167 = vrcp.f32 %v2595_v33  ;;  %vm226_vm8 = vweird.f32 %v2595_v33 }
 0x33c   :  { %v2648_v8 = vpop.eup %2167 }
 0x33d   :  { %v2628_v55 = vpop.xlane.xlu1 %465  ;;  %v222_v60 = vmul.f32 %v2648_v8, %v2595_v33  ;;  %vm227_vm6 = vweird.f32 %v2648_v8 }
 0x33e   :  { %2169 = vrcp.f32 %v2628_v55  ;;  %936 = vrot.lane.b32.xlu1 %v2492_v2, %s2249_s4  ;;  %v192_v2 = vstv %s2616_s7  ;;  %v493_v31 = vand.u32 2147483648, %v2628_v55  ;;  %v491_v36 = vand.u32 2147483647, %v2628_v55  ;;  %vm228_vm11 = vmor %vm226_vm8, %vm227_vm6 }
 0x33f   :  { %v223_v49 = vsub.f32 1.0, %v222_v60  ;;  %vm487_vm13 = vweird.f32 %v2628_v55  ;;  %v2744_v18 = vmul.f32 %v192_v2, %v191_v51  ;;  %v230_v60 = vand.u32 2147483647, %v2595_v33 }
 0x340   :  { %v494_v63 = vor.u32 1.1754944e-38, %v493_v31  ;;  %vm492_vm2 = vcmp.eq.f32.partialorder %v491_v36, 8.507059e+37  ;;  %v2760_v31 = vstv %s78_s1  ;;  %v176_v36 = vmul.f32 %v2532_v40, %v175_v13 }
 0x341   :  { %v224_v41 = vmul.f32 %v2648_v8, %v223_v49  ;;  %vm231_vm12 = vcmp.eq.f32.partialorder %v230_v60, 8.507059e+37 }
 0x342   :  { %v2780_v48 = vmul.f32 %v192_v2, %v176_v36  ;;  %v765_v2 = vpop.permute.xlu0 %764 }
 0x343   :  { %v225_v19 = vadd.f32 %v2648_v8, %v224_v41 }
 0x344   :  { %v2170_v12 = vpop.eup %2169 }
 0x345   :  { %v483_v20 = vmul.f32 %v2170_v12, %v2628_v55  ;;  %v2664_v21 = vpop.xlane.xlu1 %637  ;;  %vm488_vm10 = vweird.f32 %v2170_v12 }
 0x346   :  { %2171 = vrcp.f32 %v2664_v21  ;;  %vm489_vm15 = vmor %vm487_vm13, %vm488_vm10  ;;  %v651_v45 = vand.u32 2147483647, %v2664_v21  ;;  %vm647_vm7 = vweird.f32 %v2664_v21 }
 0x347   :  { %v484_v28 = vsub.f32 1.0, %v483_v20 }
 0x348   :  { %vm652_vm10 = vcmp.eq.f32.partialorder %v651_v45, 8.507059e+37 }
 0x349   :  { %v485_v34 = vmul.f32 %v2170_v12, %v484_v28 }
 0x34b   :  { %v486_v50 = vadd.f32 %v2170_v12, %v485_v34 }
 0x34c   :  { %v2172_v27 = vpop.eup %2171 }
 0x34d   :  { %v490_v57 = vsel %vm489_vm15, %v2170_v12, %v486_v50  ;;  %v643_v55 = vmul.f32 %v2172_v27, %v2664_v21  ;;  %v653_v12 = vand.u32 2147483648, %v2664_v21  ;;  %vm648_vm4 = vweird.f32 %v2172_v27 }
 0x34e   :  { %v495_v59 = vsel %vm492_vm2, %v494_v63, %v490_v57  ;;  %vm649_vm9 = vmor %vm647_vm7, %vm648_vm4  ;;  %v229_v21 = vsel %vm228_vm11, %v2648_v8, %v225_v19 }
 0x34f   :  { %v496_v3 = vmul.f32 %v2570_v15, %v495_v59  ;;  %v644_v4 = vsub.f32 1.0, %v643_v55  ;;  %v299_v15 = vmul.f32 %v2528_v38, %v298_v24  ;;  %v232_v38 = vand.u32 2147483648, %v2595_v33 }
 0x350   :  { %v654_v26 = vor.u32 1.1754944e-38, %v653_v12 }
 0x351   :  { %v499_v14 = vmul.f32 %v2651_v10, %v496_v3  ;;  %v645_v16 = vmul.f32 %v2172_v27, %v644_v4  ;;  %v2769_v33 = vmul.f32 %v315_v9, %v299_v15  ;;  %v233_v37 = vor.u32 1.1754944e-38, %v232_v38 }
 0x353   :  { %v646_v20 = vadd.f32 %v2172_v27, %v645_v16  ;;  %v501_v25 = vadd.f32 %v499_v14, %v2733_v5  ;;  %v234_v46 = vsel %vm231_vm12, %v233_v37, %v229_v21 }
 0x354   :  { %v235_v9 = vmul.f32 %v2566_v11, %v234_v46 }
 0x355   :  { %v650_v28 = vsel %vm649_vm9, %v2172_v27, %v646_v20  ;;  %v504_v29 = vmul.f32 %v2735_v6, %v501_v25 }
 0x356   :  { %v655_v58 = vsel %vm652_vm10, %v654_v26, %v650_v28  ;;  %v2787_v50 = vmul.f32 %v251_v30, %v235_v9  ;;  %v595_v28 = vpop.permute.xlu2 %594 }
 0x357   :  { %v656_v32 = vmul.f32 %v2574_v17, %v655_v58  ;;  %v506_v34 = vadd.f32 %v504_v29, %v2744_v18 }
 0x359   :  { %v672_v42 = vmul.f32 %v656_v32, %v2651_v10  ;;  %v509_v43 = vmul.f32 %v2760_v31, %v506_v34 }
 0x35b   :  { %v674_v8 = vadd.f32 %v672_v42, %v2769_v33  ;;  %v511_v17 = vadd.f32 %v509_v43, %v2772_v39 }
 0x35d   :  { %v767_v35 = vpop.permute.xlu1 %766  ;;  %2042 = vmatmul.msk.f32.vlgmr.msrb.gmra.mxu1 %vm143_vm3, %v511_v17  ;;  %v676_v40 = vmul.f32 %v674_v8, %v2735_v6 }
 0x35e   :  { %2051 = vmatpush.xpose.msk.msrb.mxu1 %vm143_vm3, %v767_v35  ;;  %v737_v21 = vpop.permute.xlu2 %736 }
 0x35f   :  { %v678_v49 = vadd.f32 %v676_v40, %v2780_v48 }
 0x361   :  { %v680_v27 = vmul.f32 %v678_v49, %v2760_v31 }
 0x363   :  { %v682_v51 = vadd.f32 %v680_v27, %v2787_v50 }
 0x365   :  { %2047 = vmatmul.msk.f32.vlgmr.msra.gmra.mxu1 %vm143_vm3, %v682_v51 }
 0x36d   :  { %2052 = vmatmul.msk.f32.vlgmr.msrb.gmra.mxu1 %vm143_vm3, %v765_v2 }
 0x388   :  { %v463_v55 = vpop.xlane.xlu1 %462 }
 0x389   :  { %2173 = vrcp.f32 %v463_v55  ;;  %v478_v41 = vand.u32 2147483648, %v463_v55  ;;  %vm472_vm14 = vweird.f32 %v463_v55  ;;  %v476_v3 = vand.u32 2147483647, %v463_v55 }
 0x38b   :  { %v479_v7 = vor.u32 1.1754944e-38, %v478_v41  ;;  %vm477_vm2 = vcmp.eq.f32.partialorder %v476_v3, 8.507059e+37 }
 0x38f   :  { %v2174_v24 = vpop.eup %2173 }
 0x390   :  { %v468_v47 = vmul.f32 %v2174_v24, %v463_v55  ;;  %vm473_vm13 = vweird.f32 %v2174_v24 }
 0x391   :  { %vm474_vm15 = vmor %vm472_vm14, %vm473_vm13 }
 0x392   :  { %v469_v53 = vsub.f32 1.0, %v468_v47 }
 0x394   :  { %v470_v59 = vmul.f32 %v2174_v24, %v469_v53 }
 0x396   :  { %v471_v0 = vadd.f32 %v2174_v24, %v470_v59 }
 0x398   :  { %v475_v4 = vsel %vm474_vm15, %v2174_v24, %v471_v0 }
 0x399   :  { %v480_v12 = vsel %vm477_vm2, %v479_v7, %v475_v4 }
 0x39a   :  { %v481_v14 = vmul.f32 %v2580_v23, %v480_v12 }
 0x39c   :  { %v498_v16 = vmul.f32 %v2651_v10, %v481_v14 }
 0x39e   :  { %v500_v13 = vadd.f32 %v498_v16, %v2769_v33 }
 0x3a0   :  { %v503_v20 = vmul.f32 %v2735_v6, %v500_v13  ;;  %v593_v29 = vpop.permute.xlu1 %592 }
 0x3a2   :  { %v505_v22 = vadd.f32 %v503_v20, %v2780_v48 }
 0x3a4   :  { %v508_v26 = vmul.f32 %v2760_v31, %v505_v22 }
 0x3a6   :  { %v510_v23 = vadd.f32 %v508_v26, %v2787_v50 }
 0x3a8   :  { %v911_v32 = vpop.permute.xlu1 %910 }
 0x3b0   :  { %v937_v36 = vpop.permute.xlu1 %936 }
 0x3da   :  { %v2793_v11 = vpop.f32.mrf.mxu1 }
 0x3e2   :  { %v2795_v52 = vpop.f32.mrf.mxu1 }
 0x3ea   :  { %v789_v54 = vpop.f32.mrf.mxu1 }
 0x3eb   :  { %v793_v63 = vmul.f32 0.35355338, %v789_v54 }
 0x3ed   :  { %v795_v56 = vsel %vm2456_vm1, -1e+09, %v793_v63 }
 0x3ee   :  { %v799_v57 = vsel %vm143_vm3, %v795_v56, -inf }
 0x3ef   :  { %800 = vmax.xlane.f32.xlu0 %v799_v57 }
 0x403   :  { %512 = vrot.lane.b32.xlu0 %v2480_v61, %s2248_s27 }
 0x40b   :  { %738 = vrot.lane.b32.xlu0 %v2480_v61, %s2247_s5 }
 0x413   :  { %882 = vrot.lane.b32.xlu0 %v2490_v1, %s2250_s20 }
 0x41b   :  { %938 = vrot.lane.b32.xlu0 %v2490_v1, %s2249_s4 }
 0x462   :  { %v801_v45 = vpop.xlane.xlu0 %800 }
 0x463   :  { %v803_v15 = vsub.f32 %v795_v56, %v801_v45 }
 0x465   :  { %v806_v19 = vmul.f32 1.442695, %v803_v15 }
 0x467   :  { %2175 = vpow2.f32 %v806_v19 }
 0x46d   :  { %v2176_v25 = vpop.eup %2175 }
 0x46e   :  { %v811_v38 = vsel %vm143_vm3, %v2176_v25, 0.0 }
 0x46f   :  { %812 = vadd.xlane.f32.xlu2 %v811_v38 }
 0x475   :  { %v513_v60 = vpop.permute.xlu0 %512 }
 0x476   :  { %533 = vmatpush.msra.mxu3 %v513_v60 }
 0x477   :  { %2041 = vmatmul.msk.f32.vlgmr.msra.gmra.mxu3 %vm143_vm3, %v510_v23 }
 0x478   :  { %2045 = vmatpush.xpose.msk.msrb.mxu3 %vm143_vm3, %v595_v28 }
 0x47d   :  { %v739_v30 = vpop.permute.xlu0 %738 }
 0x47e   :  { %2049 = vmatpush.xpose.msk.msra.mxu3 %vm143_vm3, %v739_v30 }
 0x47f   :  { %2046 = vmatmul.msk.f32.vlgmr.msrb.gmra.mxu3 %vm143_vm3, %v593_v29 }
 0x485   :  { %v883_v58 = vpop.permute.xlu0 %882 }
 0x486   :  { %903 = vmatpush.msrb.mxu3 %v883_v58 }
 0x487   :  { %908 = vrot.lane.b32.xlu2 %v2482_v62, %s2249_s4  ;;  %2050 = vmatmul.msk.f32.vlgmr.msra.gmra.mxu3 %vm143_vm3, %v737_v21 }
 0x488   :  { %2055 = vmatpush.xpose.msk.msra.mxu3 %vm143_vm3, %v911_v32 }
 0x48d   :  { %v939_v34 = vpop.permute.xlu0 %938 }
 0x48e   :  { %2057 = vmatpush.xpose.msk.msra.mxu1 %vm143_vm3, %v939_v34 }
 0x491   :  { %2058 = vmatmul.msk.f32.vlgmr.msra.gmra.mxu1 %vm143_vm3, %v937_v36 }
 0x4e2   :  { %v813_v37 = vpop.xlane.xlu2 %812 }
 0x4e3   :  { %2177 = vrcp.f32 %v813_v37  ;;  %v840_v8 = vand.u32 2147483648, %v813_v37  ;;  %v838_v9 = vand.u32 2147483647, %v813_v37  ;;  %vm834_vm4 = vweird.f32 %v813_v37 }
 0x4e5   :  { %v841_v35 = vor.u32 1.1754944e-38, %v840_v8  ;;  %vm839_vm7 = vcmp.eq.f32.partialorder %v838_v9, 8.507059e+37 }
 0x4e9   :  { %v2178_v42 = vpop.eup %2177 }
 0x4ea   :  { %v830_v43 = vmul.f32 %v2178_v42, %v813_v37  ;;  %vm835_vm5 = vweird.f32 %v2178_v42  ;;  %v909_v0 = vpop.permute.xlu2 %908 }
 0x4eb   :  { %vm836_vm6 = vmor %vm834_vm4, %vm835_vm5 }
 0x4ec   :  { %v831_v46 = vsub.f32 1.0, %v830_v43 }
 0x4ee   :  { %v832_v17 = vmul.f32 %v2178_v42, %v831_v46 }
 0x4f0   :  { %v833_v62 = vadd.f32 %v2178_v42, %v832_v17 }
 0x4f2   :  { %v837_v40 = vsel %vm836_vm6, %v2178_v42, %v833_v62 }
 0x4f3   :  { %v842_v49 = vsel %vm839_vm7, %v841_v35, %v837_v40 }
 0x4f4   :  { %v843_v27 = vmul.f32 %v2176_v25, %v842_v49 }
 0x4f6   :  { %v845_v51 = vmul.f32 %v843_v27, %v2651_v10 }
 0x4f8   :  { %v847_v2 = vadd.f32 %v845_v51, %v2733_v5 }
 0x4fa   :  { %v2828_v54 = vpop.f32.mrf.mxu3  ;;  %v849_v63 = vmul.f32 %v847_v2, %v2735_v6 }
 0x4fc   :  { %v851_v56 = vadd.f32 %v849_v63, %v2744_v18 }
 0x4fe   :  { %v853_v57 = vmul.f32 %v851_v56, %v2760_v31 }
 0x500   :  { %v855_v55 = vadd.f32 %v853_v57, %v2772_v39 }
 0x502   :  { %v617_v24 = vpop.f32.mrf.mxu3  ;;  %2054 = vmatmul.msk.f32.vlgmr.msrb.gmra.mxu3 %vm143_vm3, %v855_v55 }
 0x503   :  { %v621_v47 = vmul.f32 0.35355338, %v617_v24 }
 0x505   :  { %v623_v53 = vsel %vm2456_vm1, -1e+09, %v621_v47 }
 0x506   :  { %v627_v59 = vsel %vm143_vm3, %v623_v53, -inf }
 0x507   :  { %628 = vmax.xlane.f32.xlu2 %v627_v59 }
 0x50a   :  { %v761_v41 = vpop.f32.mrf.mxu3  ;;  %2056 = vmatmul.msk.f32.vlgmr.msra.gmra.mxu3 %vm143_vm3, %v909_v0 }
 0x50b   :  { %v792_v3 = vmul.f32 0.35355338, %v761_v41 }
 0x50d   :  { %v794_v4 = vsel %vm2456_vm1, -1e+09, %v792_v3 }
 0x50e   :  { %v961_v7 = vpop.f32.mrf.mxu1  ;;  %v796_v12 = vsel %vm143_vm3, %v794_v4, -inf }
 0x50f   :  { %v965_v14 = vmul.f32 0.35355338, %v961_v7  ;;  %797 = vmax.xlane.f32.xlu0 %v796_v12 }
 0x511   :  { %v967_v16 = vsel %vm2456_vm1, -1e+09, %v965_v14 }
 0x512   :  { %v971_v45 = vsel %vm143_vm3, %v967_v16, -inf }
 0x513   :  { %972 = vmax.xlane.f32.xlu2 %v971_v45 }
 0x57a   :  { %v629_v15 = vpop.xlane.xlu2 %628 }
 0x57b   :  { %v631_v13 = vsub.f32 %v623_v53, %v629_v15 }
 0x57d   :  { %v634_v19 = vmul.f32 1.442695, %v631_v13 }
 0x57f   :  { %2179 = vpow2.f32 %v634_v19 }
 0x582   :  { %v798_v25 = vpop.xlane.xlu0 %797 }
 0x583   :  { %v802_v23 = vsub.f32 %v794_v4, %v798_v25 }
 0x585   :  { %v2180_v20 = vpop.eup %2179  ;;  %v2845_v22 = vpop.f32.mrf.mxu3  ;;  %v804_v29 = vmul.f32 1.442695, %v802_v23 }
 0x586   :  { %v973_v38 = vpop.xlane.xlu2 %972  ;;  %v639_v26 = vsel %vm143_vm3, %v2180_v20, 0.0 }
 0x587   :  { %v975_v60 = vsub.f32 %v967_v16, %v973_v38  ;;  %640 = vadd.xlane.f32.xlu0 %v639_v26 }
 0x589   :  { %v978_v28 = vmul.f32 1.442695, %v975_v60 }
 0x58b   :  { %2181 = vpow2.f32 %v978_v28 }
 0x58c   :  { %2183 = vpow2.f32 %v804_v29 }
 0x58d   :  { %v933_v30 = vpop.f32.mrf.mxu3 }
 0x58e   :  { %v964_v58 = vmul.f32 0.35355338, %v933_v30 }
 0x590   :  { %v966_v21 = vsel %vm2456_vm1, -1e+09, %v964_v58 }
 0x591   :  { %v2182_v32 = vpop.eup %2181  ;;  %v968_v34 = vsel %vm143_vm3, %v966_v21, -inf }
 0x592   :  { %969 = vmax.xlane.f32.xlu1 %v968_v34  ;;  %v983_v36 = vsel %vm143_vm3, %v2182_v32, 0.0  ;;  %v2852_v37 = vpop.eup %2183 }
 0x593   :  { %984 = vadd.xlane.f32.xlu0 %v983_v36  ;;  %v808_v42 = vsel %vm143_vm3, %v2852_v37, 0.0 }
 0x59a   :  { %809 = vadd.xlane.f32.xlu1 %v808_v42 }
 0x5a7   :  { %1028 = vrot.lane.b32.xlu0 %v2480_v61, %s2251_s21 }
 0x5af   :  { %1082 = vrot.lane.b32.xlu0 %v2795_v52, %s2252_s22 }
 0x5b3   :  { %710 = vrot.lane.b32.xlu1 %v2490_v1, %s2246_s3 }
 0x5bb   :  { %1054 = vrot.lane.b32.xlu1 %v2490_v1, %s2251_s21 }
 0x5fa   :  { %v641_v43 = vpop.xlane.xlu0 %640 }
 0x5fb   :  { %2185 = vrcp.f32 %v641_v43  ;;  %v668_v9 = vand.u32 2147483648, %v641_v43  ;;  %v666_v40 = vand.u32 2147483647, %v641_v43  ;;  %vm662_vm9 = vweird.f32 %v641_v43 }
 0x5fd   :  { %v669_v2 = vor.u32 1.1754944e-38, %v668_v9  ;;  %vm667_vm11 = vcmp.eq.f32.partialorder %v666_v40, 8.507059e+37 }
 0x601   :  { %v2186_v46 = vpop.eup %2185 }
 0x602   :  { %v658_v8 = vmul.f32 %v2186_v46, %v641_v43  ;;  %vm663_vm8 = vweird.f32 %v2186_v46 }
 0x603   :  { %vm664_vm10 = vmor %vm662_vm9, %vm663_vm8 }
 0x604   :  { %v659_v17 = vsub.f32 1.0, %v658_v8 }
 0x605   :  { %v970_v62 = vpop.xlane.xlu1 %969 }
 0x606   :  { %v660_v35 = vmul.f32 %v2186_v46, %v659_v17  ;;  %v974_v49 = vsub.f32 %v966_v21, %v970_v62  ;;  %v985_v27 = vpop.xlane.xlu0 %984 }
 0x607   :  { %2187 = vrcp.f32 %v985_v27  ;;  %v1012_v59 = vand.u32 2147483648, %v985_v27  ;;  %v1010_v3 = vand.u32 2147483647, %v985_v27  ;;  %vm1006_vm13 = vweird.f32 %v985_v27 }
 0x608   :  { %v661_v52 = vadd.f32 %v2186_v46, %v660_v35  ;;  %v976_v51 = vmul.f32 1.442695, %v974_v49 }
 0x609   :  { %v1013_v12 = vor.u32 1.1754944e-38, %v1012_v59  ;;  %vm1011_vm15 = vcmp.eq.f32.partialorder %v1010_v3, 8.507059e+37 }
 0x60a   :  { %v665_v63 = vsel %vm664_vm10, %v2186_v46, %v661_v52  ;;  %2189 = vpow2.f32 %v976_v51 }
 0x60b   :  { %v670_v1 = vsel %vm667_vm11, %v669_v2, %v665_v63  ;;  %vm1106_vm11 = vcmask 130048  }
 0x60c   :  { %v671_v57 = vmul.f32 %v2180_v20, %v670_v1 }
 0x60d   :  { %v2188_v56 = vpop.eup %2187  ;;  %v810_v20 = vpop.xlane.xlu1 %809 }
 0x60e   :  { %v1002_v55 = vmul.f32 %v2188_v56, %v985_v27  ;;  %v673_v53 = vmul.f32 %v671_v57, %v2651_v10  ;;  %vm1007_vm12 = vweird.f32 %v2188_v56  ;;  %2191 = vrcp.f32 %v810_v20 }
 0x60f   :  { %vm1008_vm14 = vmor %vm1006_vm13, %vm1007_vm12  ;;  %v825_v43 = vand.u32 2147483648, %v810_v20  ;;  %vm819_vm5 = vweird.f32 %v810_v20  ;;  %v823_v46 = vand.u32 2147483647, %v810_v20  ;;  %vm1109_vm12 = vcmask 195584  }
 0x610   :  { %v2864_v24 = vpop.eup %2189  ;;  %v1003_v47 = vsub.f32 1.0, %v1002_v55  ;;  %v675_v7 = vadd.f32 %v673_v53, %v2733_v5 }
 0x611   :  { %v980_v0 = vsel %vm143_vm3, %v2864_v24, 0.0  ;;  %v826_v17 = vor.u32 1.1754944e-38, %v825_v43  ;;  %vm824_vm6 = vcmp.eq.f32.partialorder %v823_v46, 8.507059e+37 }
 0x612   :  { %v1004_v41 = vmul.f32 %v2188_v56, %v1003_v47  ;;  %981 = vadd.xlane.f32.xlu2 %v980_v0  ;;  %v677_v15 = vmul.f32 %v675_v7, %v2735_v6 }
 0x614   :  { %v1005_v4 = vadd.f32 %v2188_v56, %v1004_v41  ;;  %v679_v25 = vadd.f32 %v677_v15, %v2744_v18  ;;  %v2192_v21 = vpop.eup %2191 }
 0x615   :  { %vm820_vm2 = vweird.f32 %v2192_v21 }
 0x616   :  { %v1009_v14 = vsel %vm1008_vm14, %v2188_v56, %v1005_v4  ;;  %v681_v38 = vmul.f32 %v679_v25, %v2760_v31  ;;  %vm821_vm4 = vmor %vm819_vm5, %vm820_vm2  ;;  %v2063_v25 = vld [vmem:[%s3263_s8 + $0x30] sm:$0xff] }
 0x617   :  { %v1014_v16 = vsel %vm1011_vm15, %v1013_v12, %v1009_v14 }
 0x618   :  { %v1015_v45 = vmul.f32 %v2182_v32, %v1014_v16  ;;  %v683_v23 = vadd.f32 %v681_v38, %v2772_v39  ;;  %v815_v32 = vmul.f32 %v2192_v21, %v810_v20  ;;  %v2064_v20 = vld [vmem:[%s3263_s8 + $0x38] sm:$0xff]  ;;  %v2070_v38 = vld [vmem:[%s3265_s10 + $0x30] sm:$0xff] }
 0x619   :  { %v1029_v56 = vpop.permute.xlu0 %1028  ;;  %1134 = vmatpush.msrb.mxu0 %v2064_v20 }
 0x61a   :  { %v1017_v13 = vmul.f32 %v1015_v45, %v2651_v10  ;;  %v816_v34 = vsub.f32 1.0, %v815_v32 }
 0x61b   :  { %1135 = vmatpush.msrb.mxu0 %v2063_v25 }
 0x61c   :  { %v1019_v19 = vadd.f32 %v1017_v13, %v2733_v5  ;;  %v817_v36 = vmul.f32 %v2192_v21, %v816_v34 }
 0x61e   :  { %v1021_v26 = vmul.f32 %v1019_v19, %v2735_v6  ;;  %v818_v42 = vadd.f32 %v2192_v21, %v817_v36 }
 0x620   :  { %v1023_v28 = vadd.f32 %v1021_v26, %v2744_v18  ;;  %v822_v8 = vsel %vm821_vm4, %v2192_v21, %v818_v42  ;;  %v2062_v26 = vld [vmem:[%s3263_s8 + $0x28] sm:$0xff] }
 0x621   :  { %1136 = vmatpush.msrb.mxu0 %v2062_v26  ;;  %v1083_v21 = vpop.permute.xlu0 %1082 }
 0x622   :  { %v1025_v29 = vmul.f32 %v1023_v28, %v2760_v31  ;;  %v2930_v28 = vld [vmem:[%s3281_s24] sm:$0xff]  ;;  %v1104_v32 = vsel %vm143_vm3, %v2828_v54, %v1083_v21 }
 0x623   :  { %v2131_v54 = vld [vmem:[%s3264_s9 + $0x1] ss:$0 sm:$0xff] }
 0x624   :  { %v1027_v58 = vadd.f32 %v1025_v29, %v2772_v39  ;;  %v2937_v29 = vld [vmem:[%s3281_s24 + $0x8] sm:$0xff] }
 0x625   :  { %v711_v60 = vpop.permute.xlu1 %710 }
 0x626   :  { %731 = vmatpush.msra.mxu2 %v711_v60  ;;  %v2069_v60 = vld [vmem:[%s3265_s10 + $0x28] sm:$0xff] }
 0x627   :  { %2048 = vmatmul.msk.f32.vlgmr.msra.gmra.mxu2 %vm143_vm3, %v683_v23  ;;  %v2061_v23 = vld [vmem:[%s3263_s8 + $0x20] sm:$0xff] }
 0x628   :  { %1137 = vmatpush.msrb.mxu0 %v2061_v23 }
 0x629   :  { %2066 = vmatmul.msk.f32.vlgmr.msrb.gmra.mxu0 %vm326_vm0, %v2930_v28 }
 0x62a   :  { %856 = vrot.lane.b32.xlu2 %v2480_v61, %s2250_s20  ;;  %v827_v61 = vsel %vm824_vm6, %v826_v17, %v822_v8 }
 0x62b   :  { %v828_v9 = vmul.f32 %v2852_v37, %v827_v61 }
 0x62d   :  { %v1055_v30 = vpop.permute.xlu1 %1054  ;;  %v844_v62 = vmul.f32 %v828_v9, %v2651_v10 }
 0x62e   :  { %1075 = vmatpush.msrb.mxu3 %v1055_v30  ;;  %v2068_v30 = vld [vmem:[%s3265_s10 + $0x20] sm:$0xff] }
 0x62f   :  { %2060 = vmatmul.msk.f32.vlgmr.msrb.gmra.mxu3 %vm143_vm3, %v1027_v58  ;;  %v846_v35 = vadd.f32 %v844_v62, %v2769_v33 }
 0x631   :  { %v848_v40 = vmul.f32 %v846_v35, %v2735_v6  ;;  %2067 = vmatmul.msk.f32.gmra.mxu0 %vm326_vm0, %v2937_v29 }
 0x633   :  { %v850_v27 = vadd.f32 %v848_v40, %v2780_v48 }
 0x635   :  { %v852_v52 = vmul.f32 %v850_v27, %v2760_v31 }
 0x637   :  { %v854_v1 = vadd.f32 %v852_v52, %v2787_v50 }
 0x685   :  { %v982_v49 = vpop.xlane.xlu2 %981 }
 0x686   :  { %2193 = vrcp.f32 %v982_v49  ;;  %v997_v57 = vand.u32 2147483648, %v982_v49  ;;  %v995_v47 = vand.u32 2147483647, %v982_v49  ;;  %vm991_vm8 = vweird.f32 %v982_v49 }
 0x688   :  { %v998_v59 = vor.u32 1.1754944e-38, %v997_v57  ;;  %vm996_vm10 = vcmp.eq.f32.partialorder %v995_v47, 8.507059e+37 }
 0x68c   :  { %v2194_v51 = vpop.eup %2193 }
 0x68d   :  { %v987_v2 = vmul.f32 %v2194_v51, %v982_v49  ;;  %v857_v63 = vpop.permute.xlu2 %856  ;;  %vm992_vm7 = vweird.f32 %v2194_v51 }
 0x68e   :  { %877 = vmatpush.msrb.mxu2 %v857_v63  ;;  %vm993_vm9 = vmor %vm991_vm8, %vm992_vm7 }
 0x68f   :  { %v988_v37 = vsub.f32 1.0, %v987_v2  ;;  %2053 = vmatmul.msk.f32.vlgmr.msrb.gmra.mxu2 %vm143_vm3, %v854_v1 }
 0x690   :  { %1049 = vmatpush.msra.mxu2 %v1029_v56 }
 0x691   :  { %v989_v55 = vmul.f32 %v2194_v51, %v988_v37 }
 0x693   :  { %v990_v53 = vadd.f32 %v2194_v51, %v989_v55 }
 0x695   :  { %v994_v0 = vsel %vm993_vm9, %v2194_v51, %v990_v53 }
 0x696   :  { %v999_v41 = vsel %vm996_vm10, %v998_v59, %v994_v0 }
 0x697   :  { %v1000_v3 = vmul.f32 %v2864_v24, %v999_v41 }
 0x699   :  { %v1016_v4 = vmul.f32 %v1000_v3, %v2651_v10 }
 0x69b   :  { %v1018_v7 = vadd.f32 %v1016_v4, %v2769_v33 }
 0x69d   :  { %v1020_v12 = vmul.f32 %v1018_v7, %v2735_v6 }
 0x69f   :  { %v1022_v14 = vadd.f32 %v1020_v12, %v2780_v48 }
 0x6a1   :  { %v1024_v16 = vmul.f32 %v1022_v14, %v2760_v31 }
 0x6a3   :  { %v1026_v45 = vadd.f32 %v1024_v16, %v2787_v50 }
 0x6a5   :  { %2059 = vmatmul.msk.f32.vlgmr.msra.gmra.mxu2 %vm143_vm3, %v1026_v45 }
 0x6a6   :  { %v1139_v62 = vpop.f32.mrf.mxu0 }
 0x6a7   :  { %v1140_v35 = vadd.f32 %v2131_v54, %v1139_v62 }
 0x6aa   :  { %v733_v15 = vpop.f32.mrf.mxu2 }
 0x6ab   :  { %1084 = vrot.lane.b32.xlu0 %v733_v15, %s2252_s22 }
 0x6ae   :  { %v1142_v40 = vpop.f32.mrf.mxu0 }
 0x6af   :  { %v1143_v49 = vadd.f32 %v2131_v54, %v1142_v40 }
 0x6b2   :  { %v1077_v19 = vpop.f32.mrf.mxu3 }
 0x712   :  { %v879_v13 = vpop.f32.mrf.mxu2 }
 0x713   :  { %1090 = vrot.lane.b32.xlu2 %v879_v13, %s2253_s16 }
 0x71b   :  { %1092 = vrot.lane.b32.xlu2 %v2845_v22, %s2253_s16  ;;  %v2071_v22 = vld [vmem:[%s3265_s10 + $0x38] sm:$0xff] }
 0x71c   :  { %1173 = vmatpush.msrb.mxu1 %v2071_v22 }
 0x71d   :  { %v1085_v43 = vpop.permute.xlu0 %1084 }
 0x71e   :  { %1174 = vmatpush.msrb.mxu1 %v2070_v38  ;;  %v1105_v8 = vsel %vm143_vm3, %v2793_v11, %v1085_v43  ;;  %v2132_v11 = vld [vmem:[%s3266_s11 + $0x1] ss:$0 sm:$0xff] }
 0x720   :  { %1175 = vmatpush.msrb.mxu1 %v2069_v60 }
 0x722   :  { %1176 = vmatpush.msrb.mxu1 %v2068_v30 }
 0x723   :  { %1354 = vrot.lane.b32.xlu2 %v1140_v35, %s2245_s2 }
 0x728   :  { %v1051_v24 = vpop.f32.mrf.mxu2 }
 0x729   :  { %1098 = vrot.lane.b32.xlu1 %v1051_v24, %s2254_s23 }
 0x72b   :  { %1382 = vrot.lane.b32.xlu2 %v1143_v49, %s2245_s2 }
 0x731   :  { %1100 = vrot.lane.b32.xlu1 %v1077_v19, %s2254_s23 }
 0x76d   :  { %v1091_v58 = vpop.permute.xlu2 %1090 }
 0x76e   :  { %v1107_v34 = vsel %vm1106_vm11, %v1104_v32, %v1091_v58 }
 0x775   :  { %v1093_v46 = vpop.permute.xlu2 %1092 }
 0x776   :  { %v1108_v17 = vsel %vm1106_vm11, %v1105_v8, %v1093_v46 }
 0x77d   :  { %v1355_v63 = vpop.permute.xlu2 %1354 }
 0x785   :  { %v1383_v1 = vpop.permute.xlu2 %1382 }
 0x79b   :  { %v1099_v36 = vpop.permute.xlu1 %1098 }
 0x79c   :  { %v2948_v42 = vsel %vm1109_vm12, %v1107_v34, %v1099_v36 }
 0x79d   :  { %2073 = vmatmul.msk.f32.vlgmr.msrb.gmra.mxu1 %vm326_vm0, %v2948_v42 }
 0x7a3   :  { %v1101_v61 = vpop.permute.xlu1 %1100 }
 0x7a4   :  { %v2956_v9 = vsel %vm1109_vm12, %v1108_v17, %v1101_v61 }
 0x7a5   :  { %2074 = vmatmul.msk.f32.gmra.mxu1 %vm326_vm0, %v2956_v9 }
 0x81a   :  { %v1178_v27 = vpop.f32.mrf.mxu1 }
 0x81b   :  { %v2968_v52 = vadd.f32 %v2132_v11, %v1178_v27 }
 0x81d   :  { %1706 = vrot.lane.b32.xlu2 %v2968_v52, %s2249_s4  ;;  %1356 = vrot.lane.b32.xlu0 %v2968_v52, %s2245_s2 }
 0x81e   :  { %2075 = vmatpush.xpose.msk.msrb.mxu2 %vm143_vm3, %v2968_v52 }
 0x821   :  { %2076 = vmatmul.msk.f32.vlgmr.msrb.gmra.mxu2 %vm143_vm3, %v1140_v35 }
 0x822   :  { %v1181_v51 = vpop.f32.mrf.mxu1 }
 0x823   :  { %v2977_v2 = vadd.f32 %v2132_v11, %v1181_v51 }
 0x825   :  { %1531 = vrot.lane.b32.xlu0 %v2968_v52, %s2247_s5  ;;  %1734 = vrot.lane.b32.xlu2 %v2977_v2, %s2249_s4 }
 0x826   :  { %1384 = vrot.lane.b32.xlu1 %v2977_v2, %s2245_s2  ;;  %2077 = vmatpush.xpose.msk.msra.mxu3 %vm143_vm3, %v2977_v2 }
 0x829   :  { %2078 = vmatmul.msk.f32.vlgmr.msra.gmra.mxu3 %vm143_vm3, %v1143_v49 }
 0x82d   :  { %1559 = vrot.lane.b32.xlu0 %v2977_v2, %s2247_s5 }
 0x82e   :  { %1529 = vrot.lane.b32.xlu1 %v1140_v35, %s2247_s5 }
 0x835   :  { %1704 = vrot.lane.b32.xlu0 %v1140_v35, %s2249_s4 }
 0x836   :  { %1557 = vrot.lane.b32.xlu1 %v1143_v49, %s2247_s5 }
 0x83e   :  { %1732 = vrot.lane.b32.xlu1 %v1143_v49, %s2249_s4  ;;  %v2123_v49 = vpack.i.bf16 %v2977_v2, %v2968_v52 }
 0x877   :  { %v1707_v37 = vpop.permute.xlu2 %1706 }
 0x87f   :  { %v1735_v53 = vpop.permute.xlu2 %1734 }
 0x88f   :  { %v1357_v56 = vpop.permute.xlu0 %1356 }
 0x890   :  { %2081 = vmatpush.xpose.msk.msra.mxu0 %vm143_vm3, %v1357_v56 }
 0x893   :  { %2082 = vmatmul.msk.f32.vlgmr.msra.gmra.mxu0 %vm143_vm3, %v1355_v63 }
 0x897   :  { %v1532_v57 = vpop.permute.xlu0 %1531 }
 0x898   :  { %v1385_v55 = vpop.permute.xlu1 %1384  ;;  %2089 = vmatpush.xpose.msk.msrb.mxu0 %vm143_vm3, %v1532_v57 }
 0x899   :  { %2083 = vmatpush.xpose.msk.msra.mxu1 %vm143_vm3, %v1385_v55 }
 0x89c   :  { %2097 = vmatpush.xpose.msk.msra.mxu0 %vm143_vm3, %v1707_v37  ;;  %2084 = vmatmul.msk.f32.vlgmr.msra.gmra.mxu1 %vm143_vm3, %v1383_v1 }
 0x89f   :  { %v1560_v47 = vpop.permute.xlu0 %1559 }
 0x8a0   :  { %v1530_v59 = vpop.permute.xlu1 %1529  ;;  %2091 = vmatpush.xpose.msk.msrb.mxu1 %vm143_vm3, %v1560_v47 }
 0x8a1   :  { %2090 = vmatmul.msk.f32.vlgmr.msrb.gmra.mxu0 %vm143_vm3, %v1530_v59 }
 0x8a4   :  { %2099 = vmatpush.xpose.msk.msra.mxu1 %vm143_vm3, %v1735_v53  ;;  %v1207_v0 = vpop.f32.mrf.mxu2 }
 0x8a5   :  { %v1236_v41 = vmul.f32 0.35355338, %v1207_v0 }
 0x8a7   :  { %v1705_v3 = vpop.permute.xlu0 %1704  ;;  %v1238_v4 = vsel %vm2456_vm1, -1e+09, %v1236_v41 }
 0x8a8   :  { %v1558_v7 = vpop.permute.xlu1 %1557  ;;  %v1240_v12 = vsel %vm143_vm3, %v1238_v4, -inf }
 0x8a9   :  { %1241 = vmax.xlane.f32.xlu0 %v1240_v12  ;;  %2092 = vmatmul.msk.f32.vlgmr.msrb.gmra.mxu1 %vm143_vm3, %v1558_v7 }
 0x8aa   :  { %2098 = vmatmul.msk.f32.vlgmr.msra.gmra.mxu0 %vm143_vm3, %v1705_v3 }
 0x8ac   :  { %v1233_v14 = vpop.f32.mrf.mxu3 }
 0x8ad   :  { %v1237_v16 = vmul.f32 0.35355338, %v1233_v14 }
 0x8af   :  { %v1239_v45 = vsel %vm2456_vm1, -1e+09, %v1237_v16 }
 0x8b0   :  { %v1733_v15 = vpop.permute.xlu1 %1732  ;;  %v1243_v13 = vsel %vm143_vm3, %v1239_v45, -inf }
 0x8b1   :  { %2100 = vmatmul.msk.f32.vlgmr.msra.gmra.mxu1 %vm143_vm3, %v1733_v15  ;;  %1244 = vmax.xlane.f32.xlu2 %v1243_v13 }
 0x910   :  { %v1379_v24 = vpop.f32.mrf.mxu0 }
 0x911   :  { %v1410_v19 = vmul.f32 0.35355338, %v1379_v24 }
 0x913   :  { %v1412_v20 = vsel %vm2456_vm1, -1e+09, %v1410_v19 }
 0x914   :  { %v1414_v25 = vsel %vm143_vm3, %v1412_v20, -inf }
 0x915   :  { %1415 = vmax.xlane.f32.xlu1 %v1414_v25 }
 0x919   :  { %v1407_v22 = vpop.f32.mrf.mxu1 }
 0x91a   :  { %v1411_v38 = vmul.f32 0.35355338, %v1407_v22 }
 0x91c   :  { %v1413_v26 = vsel %vm2456_vm1, -1e+09, %v1411_v38  ;;  %v1242_v27 = vpop.xlane.xlu0 %1241 }
 0x91d   :  { %v1417_v60 = vsel %vm143_vm3, %v1413_v26, -inf  ;;  %v1246_v63 = vsub.f32 %v1238_v4, %v1242_v27 }
 0x91e   :  { %v1554_v23 = vpop.f32.mrf.mxu0  ;;  %1418 = vmax.xlane.f32.xlu2 %v1417_v60 }
 0x91f   :  { %v1585_v30 = vmul.f32 0.35355338, %v1554_v23  ;;  %v1248_v1 = vmul.f32 1.442695, %v1246_v63 }
 0x921   :  { %v1587_v58 = vsel %vm2456_vm1, -1e+09, %v1585_v30 }
 0x922   :  { %v1589_v21 = vsel %vm143_vm3, %v1587_v58, -inf }
 0x923   :  { %1590 = vmax.xlane.f32.xlu0 %v1589_v21 }
 0x924   :  { %v1245_v11 = vpop.xlane.xlu2 %1244 }
 0x925   :  { %v1247_v51 = vsub.f32 %v1239_v45, %v1245_v11 }
 0x926   :  { %v1582_v32 = vpop.f32.mrf.mxu1 }
 0x927   :  { %v1586_v34 = vmul.f32 0.35355338, %v1582_v32  ;;  %v1729_v36 = vpop.f32.mrf.mxu0  ;;  %v1250_v44 = vmul.f32 1.442695, %v1247_v51 }
 0x928   :  { %v1760_v43 = vmul.f32 0.35355338, %v1729_v36 }
 0x929   :  { %v1588_v46 = vsel %vm2456_vm1, -1e+09, %v1586_v34  ;;  %2195 = vpow2.f32 %v1250_v44 }
 0x92a   :  { %v1592_v8 = vsel %vm143_vm3, %v1588_v46, -inf  ;;  %v1762_v17 = vsel %vm2456_vm1, -1e+09, %v1760_v43  ;;  %2197 = vpow2.f32 %v1248_v1 }
 0x92b   :  { %1593 = vmax.xlane.f32.xlu1 %v1592_v8  ;;  %v1764_v61 = vsel %vm143_vm3, %v1762_v17, -inf }
 0x92c   :  { %1765 = vmax.xlane.f32.xlu2 %v1764_v61 }
 0x92e   :  { %v1757_v54 = vpop.f32.mrf.mxu1 }
 0x92f   :  { %v1761_v62 = vmul.f32 0.35355338, %v1757_v54  ;;  %v3037_v56 = vpop.eup %2195 }
 0x930   :  { %v3039_v37 = vpop.eup %2197  ;;  %v1255_v57 = vsel %vm143_vm3, %v3037_v56, 0.0 }
 0x931   :  { %v1763_v35 = vsel %vm2456_vm1, -1e+09, %v1761_v62  ;;  %v1252_v55 = vsel %vm143_vm3, %v3039_v37, 0.0 }
 0x932   :  { %v1767_v40 = vsel %vm143_vm3, %v1763_v35, -inf }
 0x933   :  { %1768 = vmax.xlane.f32.xlu0 %v1767_v40 }
 0x944   :  { %2124 = vrot.lane.b32.xlu2 %v2123_v49, %s2248_s27  ;;  %1474 = vrot.lane.b32.xlu1 %v2968_v52, %s2246_s3 }
 0x947   :  { %1500 = vrot.lane.b32.xlu0 %v2977_v2, %s2246_s3 }
 0x96d   :  { %1256 = vadd.xlane.f32.xlu2 %v1255_v57 }
 0x96e   :  { %1253 = vadd.xlane.f32.xlu1 %v1252_v55 }
 0x988   :  { %v1416_v47 = vpop.xlane.xlu1 %1415 }
 0x989   :  { %v1420_v53 = vsub.f32 %v1412_v20, %v1416_v47 }
 0x98b   :  { %v1422_v59 = vmul.f32 1.442695, %v1420_v53 }
 0x98d   :  { %2199 = vpow2.f32 %v1422_v59 }
 0x991   :  { %v1419_v0 = vpop.xlane.xlu2 %1418 }
 0x992   :  { %v1421_v41 = vsub.f32 %v1413_v26, %v1419_v0 }
 0x993   :  { %v3045_v3 = vpop.eup %2199 }
 0x994   :  { %v1424_v4 = vmul.f32 1.442695, %v1421_v41  ;;  %v1426_v7 = vsel %vm143_vm3, %v3045_v3, 0.0 }
 0x995   :  { %1427 = vadd.xlane.f32.xlu0 %v1426_v7 }
 0x996   :  { %2201 = vpow2.f32 %v1424_v4  ;;  %v1591_v12 = vpop.xlane.xlu0 %1590 }
 0x997   :  { %v1595_v14 = vsub.f32 %v1587_v58, %v1591_v12 }
 0x999   :  { %v1597_v16 = vmul.f32 1.442695, %v1595_v14 }
 0x99b   :  { %2203 = vpow2.f32 %v1597_v16 }
 0x99c   :  { %v3049_v45 = vpop.eup %2201 }
 0x99d   :  { %v1429_v15 = vsel %vm143_vm3, %v3049_v45, 0.0 }
 0x99e   :  { %v1594_v13 = vpop.xlane.xlu1 %1593  ;;  %1430 = vadd.xlane.f32.xlu1 %v1429_v15 }
 0x99f   :  { %v1596_v24 = vsub.f32 %v1588_v46, %v1594_v13  ;;  %v1766_v19 = vpop.xlane.xlu2 %1765 }
 0x9a0   :  { %v1770_v20 = vsub.f32 %v1762_v17, %v1766_v19 }
 0x9a1   :  { %v3053_v25 = vpop.eup %2203  ;;  %v1599_v22 = vmul.f32 1.442695, %v1596_v24 }
 0x9a2   :  { %v1772_v38 = vmul.f32 1.442695, %v1770_v20  ;;  %v1601_v26 = vsel %vm143_vm3, %v3053_v25, 0.0 }
 0x9a3   :  { %2205 = vpow2.f32 %v1599_v22  ;;  %1602 = vadd.xlane.f32.xlu2 %v1601_v26 }
 0x9a4   :  { %2207 = vpow2.f32 %v1772_v38 }
 0x9a6   :  { %v1769_v60 = vpop.xlane.xlu0 %1768 }
 0x9a7   :  { %v1771_v23 = vsub.f32 %v1763_v35, %v1769_v60  ;;  %v2125_v30 = vpop.permute.xlu2 %2124 }
 0x9a8   :  { %v2127_v58 = vunpack.i.h.bf16 %v2125_v30  ;;  %v2126_v21 = vunpack.i.l.bf16 %v2125_v30 }
 0x9a9   :  { %v3057_v32 = vpop.eup %2205  ;;  %v1774_v34 = vmul.f32 1.442695, %v1771_v23 }
 0x9aa   :  { %v3059_v36 = vpop.eup %2207  ;;  %1321 = vmatpush.msra.mxu2 %v2126_v21  ;;  %1347 = vmatpush.msrb.mxu3 %v2127_v58  ;;  %v1604_v43 = vsel %vm143_vm3, %v3057_v32, 0.0 }
 0x9ab   :  { %2209 = vpow2.f32 %v1774_v34  ;;  %1605 = vadd.xlane.f32.xlu0 %v1604_v43  ;;  %v1776_v46 = vsel %vm143_vm3, %v3059_v36, 0.0 }
 0x9ac   :  { %1777 = vadd.xlane.f32.xlu1 %v1776_v46 }
 0x9b1   :  { %v3065_v8 = vpop.eup %2209 }
 0x9b2   :  { %v1779_v17 = vsel %vm143_vm3, %v3065_v8, 0.0 }
 0x9b3   :  { %1780 = vadd.xlane.f32.xlu0 %v1779_v17 }
 0x9b6   :  { %v1475_v61 = vpop.permute.xlu1 %1474 }
 0x9b7   :  { %1495 = vmatpush.msrb.mxu2 %v1475_v61 }
 0x9b9   :  { %v1501_v54 = vpop.permute.xlu0 %1500 }
 0x9ba   :  { %1521 = vmatpush.msra.mxu3 %v1501_v54 }
 0x9bb   :  { %1649 = vrot.lane.b32.xlu2 %v2968_v52, %s2250_s20 }
 0x9c3   :  { %1850 = vrot.lane.b32.xlu2 %v2977_v2, %s2251_s21 }
 0x9c5   :  { %1824 = vrot.lane.b32.xlu1 %v2968_v52, %s2251_s21 }
 0x9c7   :  { %1675 = vrot.lane.b32.xlu0 %v2977_v2, %s2250_s20 }
 0x9e0   :  { %v1257_v62 = vpop.xlane.xlu2 %1256 }
 0x9e1   :  { %2211 = vrcp.f32 %v1257_v62  ;;  %v1254_v35 = vpop.xlane.xlu1 %1253  ;;  %v1284_v63 = vand.u32 2147483648, %v1257_v62  ;;  %v1282_v57 = vand.u32 2147483647, %v1257_v62  ;;  %vm1278_vm14 = vweird.f32 %v1257_v62 }
 0x9e2   :  { %2213 = vrcp.f32 %v1254_v35  ;;  %v1269_v55 = vand.u32 2147483648, %v1254_v35  ;;  %v1267_v52 = vand.u32 2147483647, %v1254_v35  ;;  %vm1263_vm2 = vweird.f32 %v1254_v35 }
 0x9e3   :  { %v1285_v2 = vor.u32 1.1754944e-38, %v1284_v63  ;;  %vm1283_vm5 = vcmp.eq.f32.partialorder %v1282_v57, 8.507059e+37 }
 0x9e4   :  { %v1270_v41 = vor.u32 1.1754944e-38, %v1269_v55  ;;  %vm1268_vm6 = vcmp.eq.f32.partialorder %v1267_v52, 8.507059e+37 }
 0x9e7   :  { %v2212_v40 = vpop.eup %2211 }
 0x9e8   :  { %v2214_v49 = vpop.eup %2213  ;;  %v1274_v11 = vmul.f32 %v2212_v40, %v1257_v62  ;;  %vm1279_vm1 = vweird.f32 %v2212_v40 }
 0x9e9   :  { %v1259_v27 = vmul.f32 %v2214_v49, %v1254_v35  ;;  %vm1264_vm13 = vweird.f32 %v2214_v49  ;;  %vm1280_vm15 = vmor %vm1278_vm14, %vm1279_vm1 }
 0x9ea   :  { %v1275_v51 = vsub.f32 1.0, %v1274_v11  ;;  %vm1265_vm4 = vmor %vm1263_vm2, %vm1264_vm13 }
 0x9eb   :  { %v1260_v44 = vsub.f32 1.0, %v1259_v27 }
 0x9ec   :  { %v1276_v1 = vmul.f32 %v2212_v40, %v1275_v51 }
 0x9ed   :  { %v1261_v47 = vmul.f32 %v2214_v49, %v1260_v44 }
 0x9ee   :  { %v1277_v53 = vadd.f32 %v2212_v40, %v1276_v1 }
 0x9ef   :  { %v1262_v59 = vadd.f32 %v2214_v49, %v1261_v47 }
 0x9f0   :  { %v1281_v0 = vsel %vm1280_vm15, %v2212_v40, %v1277_v53 }
 0x9f1   :  { %v1286_v4 = vsel %vm1283_vm5, %v1285_v2, %v1281_v0  ;;  %v1266_v7 = vsel %vm1265_vm4, %v2214_v49, %v1262_v59 }
 0x9f2   :  { %v1287_v12 = vmul.f32 %v3037_v56, %v1286_v4  ;;  %v1271_v14 = vsel %vm1268_vm6, %v1270_v41, %v1266_v7 }
 0x9f3   :  { %v1272_v16 = vmul.f32 %v3039_v37, %v1271_v14 }
 0x9f4   :  { %v1289_v15 = vmul.f32 %v1287_v12, %v2651_v10 }
 0x9f5   :  { %v1288_v13 = vmul.f32 %v1272_v16, %v2651_v10 }
 0x9f6   :  { %v1291_v24 = vadd.f32 %v1289_v15, %v2733_v5 }
 0x9f7   :  { %v1290_v19 = vadd.f32 %v1288_v13, %v2769_v33 }
 0x9f8   :  { %v1293_v20 = vmul.f32 %v1291_v24, %v2735_v6 }
 0x9f9   :  { %v1292_v22 = vmul.f32 %v1290_v19, %v2735_v6 }
 0x9fa   :  { %v1295_v38 = vadd.f32 %v1293_v20, %v2744_v18 }
 0x9fb   :  { %v1294_v26 = vadd.f32 %v1292_v22, %v2780_v48 }
 0x9fc   :  { %v1297_v56 = vmul.f32 %v1295_v38, %v2760_v31 }
 0x9fd   :  { %v1296_v37 = vmul.f32 %v1294_v26, %v2760_v31 }
 0x9fe   :  { %v1299_v60 = vadd.f32 %v1297_v56, %v2772_v39 }
 0x9ff   :  { %v1298_v23 = vadd.f32 %v1296_v37, %v2787_v50 }
 0xa00   :  { %2080 = vmatmul.msk.f32.vlgmr.msrb.gmra.mxu3 %vm143_vm3, %v1299_v60  ;;  %1353 = vst.msk [vmem:[%s3273_s18 + $0x8] sm:$0xff] %vm143_vm3, %v1299_v60 }
 0xa01   :  { %2079 = vmatmul.msk.f32.vlgmr.msra.gmra.mxu2 %vm143_vm3, %v1298_v23  ;;  %1352 = vst.msk [vmem:[%s3273_s18] sm:$0xff] %vm143_vm3, %v1298_v23 }
 0xa08   :  { %v1428_v30 = vpop.xlane.xlu0 %1427 }
 0xa09   :  { %2215 = vrcp.f32 %v1428_v30  ;;  %v1443_v46 = vand.u32 2147483648, %v1428_v30  ;;  %v1441_v61 = vand.u32 2147483647, %v1428_v30  ;;  %vm1437_vm8 = vweird.f32 %v1428_v30 }
 0xa0b   :  { %v1444_v35 = vor.u32 1.1754944e-38, %v1443_v46  ;;  %vm1442_vm10 = vcmp.eq.f32.partialorder %v1441_v61, 8.507059e+37 }
 0xa0f   :  { %v2216_v58 = vpop.eup %2215 }
 0xa10   :  { %v1433_v21 = vmul.f32 %v2216_v58, %v1428_v30  ;;  %vm1438_vm7 = vweird.f32 %v2216_v58 }
 0xa11   :  { %v1431_v34 = vpop.xlane.xlu1 %1430  ;;  %vm1439_vm9 = vmor %vm1437_vm8, %vm1438_vm7 }
 0xa12   :  { %v1434_v43 = vsub.f32 1.0, %v1433_v21  ;;  %2217 = vrcp.f32 %v1431_v34  ;;  %v1458_v1 = vand.u32 2147483648, %v1431_v34  ;;  %v1456_v47 = vand.u32 2147483647, %v1431_v34 }
 0xa13   :  { %vm1452_vm13 = vweird.f32 %v1431_v34 }
 0xa14   :  { %v1435_v17 = vmul.f32 %v2216_v58, %v1434_v43  ;;  %vm1457_vm15 = vcmp.eq.f32.partialorder %v1456_v47, 8.507059e+37 }
 0xa16   :  { %v1436_v54 = vadd.f32 %v2216_v58, %v1435_v17  ;;  %v1603_v62 = vpop.xlane.xlu2 %1602 }
 0xa17   :  { %2219 = vrcp.f32 %v1603_v62  ;;  %v1616_v12 = vand.u32 2147483647, %v1603_v62  ;;  %v1618_v14 = vand.u32 2147483648, %v1603_v62  ;;  %vm1612_vm5 = vweird.f32 %v1603_v62 }
 0xa18   :  { %v2218_v40 = vpop.eup %2217  ;;  %v1440_v49 = vsel %vm1439_vm9, %v2216_v58, %v1436_v54 }
 0xa19   :  { %v1445_v11 = vsel %vm1442_vm10, %v1444_v35, %v1440_v49  ;;  %v1448_v27 = vmul.f32 %v2218_v40, %v1431_v34  ;;  %vm1453_vm1 = vweird.f32 %v2218_v40  ;;  %v1619_v26 = vor.u32 1.1754944e-38, %v1618_v14 }
 0xa1a   :  { %v1446_v51 = vmul.f32 %v3045_v3, %v1445_v11  ;;  %vm1454_vm14 = vmor %vm1452_vm13, %vm1453_vm1  ;;  %v1459_v3 = vor.u32 1.1754944e-38, %v1458_v1  ;;  %vm1617_vm6 = vcmp.eq.f32.partialorder %v1616_v12, 8.507059e+37 }
 0xa1b   :  { %v1449_v63 = vsub.f32 1.0, %v1448_v27 }
 0xa1c   :  { %v1462_v44 = vmul.f32 %v1446_v51, %v2651_v10 }
 0xa1d   :  { %v2220_v57 = vpop.eup %2219  ;;  %v1450_v55 = vmul.f32 %v2218_v40, %v1449_v63 }
 0xa1e   :  { %v1464_v52 = vadd.f32 %v1462_v44, %v2769_v33  ;;  %v1608_v53 = vmul.f32 %v2220_v57, %v1603_v62  ;;  %v1606_v2 = vpop.xlane.xlu0 %1605  ;;  %v1650_v59 = vpop.permute.xlu2 %1649  ;;  %vm1613_vm2 = vweird.f32 %v2220_v57 }
 0xa1f   :  { %v1451_v0 = vadd.f32 %v2218_v40, %v1450_v55  ;;  %2221 = vrcp.f32 %v1606_v2  ;;  %v3104_v41 = vpop.xlane.xlu1 %1777  ;;  %1670 = vmatpush.msra.mxu2 %v1650_v59  ;;  %vm1614_vm4 = vmor %vm1612_vm5, %vm1613_vm2  ;;  %v1631_v46 = vand.u32 2147483647, %v1606_v2  ;;  %v1633_v17 = vand.u32 2147483648, %v1606_v2 }
 0xa20   :  { %v1609_v4 = vsub.f32 1.0, %v1608_v53  ;;  %2223 = vrcp.f32 %v3104_v41  ;;  %v1466_v13 = vmul.f32 %v1464_v52, %v2735_v6  ;;  %v1793_v54 = vand.u32 2147483648, %v3104_v41 }
 0xa21   :  { %v1455_v7 = vsel %vm1454_vm14, %v2218_v40, %v1451_v0  ;;  %vm1627_vm9 = vweird.f32 %v1606_v2  ;;  %vm1632_vm1 = vcmp.eq.f32.partialorder %v1631_v46, 8.507059e+37  ;;  %v1634_v44 = vor.u32 1.1754944e-38, %v1633_v17 }
 0xa22   :  { %v1460_v16 = vsel %vm1457_vm15, %v1459_v3, %v1455_v7  ;;  %v1610_v15 = vmul.f32 %v2220_v57, %v1609_v4  ;;  %v1468_v20 = vadd.f32 %v1466_v13, %v2780_v48  ;;  %vm1787_vm13 = vweird.f32 %v3104_v41 }
 0xa23   :  { %v1461_v24 = vmul.f32 %v3049_v45, %v1460_v16  ;;  %v1794_v47 = vor.u32 1.1754944e-38, %v1793_v54 }
 0xa24   :  { %v1611_v19 = vadd.f32 %v2220_v57, %v1610_v15  ;;  %v1470_v30 = vmul.f32 %v1468_v20, %v2760_v31 }
 0xa25   :  { %v2222_v22 = vpop.eup %2221  ;;  %v1463_v38 = vmul.f32 %v1461_v24, %v2651_v10 }
 0xa26   :  { %v2224_v56 = vpop.eup %2223  ;;  %v1615_v37 = vsel %vm1614_vm4, %v2220_v57, %v1611_v19  ;;  %v1623_v60 = vmul.f32 %v2222_v22, %v1606_v2  ;;  %v3111_v23 = vpop.xlane.xlu0 %1780  ;;  %v1472_v62 = vadd.f32 %v1470_v30, %v2787_v50  ;;  %vm1628_vm7 = vweird.f32 %v2222_v22 }
 0xa27   :  { %v1465_v58 = vadd.f32 %v1463_v38, %v2733_v5  ;;  %v1620_v45 = vsel %vm1617_vm6, %v1619_v26, %v1615_v37  ;;  %v1783_v21 = vmul.f32 %v2224_v56, %v3104_v41  ;;  %2225 = vrcp.f32 %v3111_v23  ;;  %vm1629_vm10 = vmor %vm1627_vm9, %vm1628_vm7 }
 0xa28   :  { %v1621_v34 = vmul.f32 %v3053_v25, %v1620_v45  ;;  %v1624_v43 = vsub.f32 1.0, %v1623_v60  ;;  %vm1788_vm8 = vweird.f32 %v2224_v56  ;;  %v1791_v25 = vand.u32 2147483647, %v3104_v41  ;;  %2085 = vmatmul.msk.f32.vlgmr.msrb.gmra.mxu2 %vm143_vm3, %v1472_v62  ;;  %2087 = vst.msk [vmem:[%s3273_s18 + $0x10] sm:$0xff] %vm143_vm3, %v1472_v62 }
 0xa29   :  { %v1784_v61 = vsub.f32 1.0, %v1783_v21  ;;  %v1467_v49 = vmul.f32 %v1465_v58, %v2735_v6  ;;  %vm1789_vm14 = vmor %vm1787_vm13, %vm1788_vm8  ;;  %v1808_v15 = vand.u32 2147483648, %v3111_v23  ;;  %vm1802_vm5 = vweird.f32 %v3111_v23 }
 0xa2a   :  { %v1637_v35 = vmul.f32 %v1621_v34, %v2651_v10  ;;  %v1625_v40 = vmul.f32 %v2222_v22, %v1624_v43  ;;  %vm1792_vm15 = vcmp.eq.f32.partialorder %v1791_v25, 8.507059e+37  ;;  %v1851_v34 = vpop.permute.xlu2 %1850  ;;  %v1916_v25 = vld [vmem:[%s3267_s12 + $0x18] sm:$0xff] }
 0xa2b   :  { %v1785_v11 = vmul.f32 %v2224_v56, %v1784_v61  ;;  %v1469_v63 = vadd.f32 %v1467_v49, %v2744_v18  ;;  %v1809_v26 = vor.u32 1.1754944e-38, %v1808_v15  ;;  %1962 = vmatpush.msrb.mxu1 %v1916_v25  ;;  %v1984_v15 = vld [vmem:[%s3270_s15 + $0x18] sm:$0xff] }
 0xa2c   :  { %v1639_v27 = vadd.f32 %v1637_v35, %v2769_v33  ;;  %v1626_v51 = vadd.f32 %v2222_v22, %v1625_v40 }
 0xa2d   :  { %v1786_v1 = vadd.f32 %v2224_v56, %v1785_v11  ;;  %v2226_v57 = vpop.eup %2225  ;;  %v1471_v52 = vmul.f32 %v1469_v63, %v2760_v31  ;;  %v1920_v11 = vld [vmem:[%s3268_s13 + $0x18] sm:$0xff]  ;;  %v1918_v63 = vld [vmem:[%s3268_s13 + $0x8] sm:$0xff] }
 0xa2e   :  { %v1630_v55 = vsel %vm1629_vm10, %v2222_v22, %v1626_v51  ;;  %v1641_v53 = vmul.f32 %v1639_v27, %v2735_v6  ;;  %v1798_v2 = vmul.f32 %v2226_v57, %v3111_v23  ;;  %vm1803_vm2 = vweird.f32 %v2226_v57  ;;  %1933 = vmatpush.msrb.mxu0 %v1920_v11  ;;  %v1919_v27 = vld [vmem:[%s3268_s13 + $0x10] sm:$0xff] }
 0xa2f   :  { %v1635_v59 = vsel %vm1632_vm1, %v1634_v44, %v1630_v55  ;;  %v1790_v0 = vsel %vm1789_vm14, %v2224_v56, %v1786_v1  ;;  %v1473_v7 = vadd.f32 %v1471_v52, %v2772_v39  ;;  %vm1804_vm4 = vmor %vm1802_vm5, %vm1803_vm2  ;;  %v1915_v51 = vld [vmem:[%s3267_s12 + $0x10] sm:$0xff]  ;;  %v1914_v44 = vld [vmem:[%s3267_s12 + $0x8] sm:$0xff] }
 0xa30   :  { %v1636_v3 = vmul.f32 %v3057_v32, %v1635_v59  ;;  %v1795_v4 = vsel %vm1792_vm15, %v1794_v47, %v1790_v0  ;;  %v1643_v41 = vadd.f32 %v1641_v53, %v2780_v48  ;;  %v1799_v14 = vsub.f32 1.0, %v1798_v2  ;;  %1934 = vmatpush.msrb.mxu0 %v1919_v27  ;;  %1963 = vmatpush.msrb.mxu1 %v1915_v51  ;;  %v1917_v1 = vld [vmem:[%s3268_s13] sm:$0xff] }
 0xa31   :  { %v1796_v12 = vmul.f32 %v3059_v36, %v1795_v4  ;;  %2086 = vmatmul.msk.f32.vlgmr.msra.gmra.mxu3 %vm143_vm3, %v1473_v7  ;;  %2088 = vst.msk [vmem:[%s3273_s18 + $0x18] sm:$0xff] %vm143_vm3, %v1473_v7  ;;  %v1806_v36 = vand.u32 2147483647, %v3111_v23 }
 0xa32   :  { %v1638_v16 = vmul.f32 %v1636_v3, %v2651_v10  ;;  %v1645_v32 = vmul.f32 %v1643_v41, %v2760_v31  ;;  %v1800_v24 = vmul.f32 %v2226_v57, %v1799_v14  ;;  %1935 = vmatpush.msrb.mxu0 %v1918_v63  ;;  %1964 = vmatpush.msrb.mxu1 %v1914_v44 }
 0xa33   :  { %v1812_v13 = vmul.f32 %v1796_v12, %v2651_v10  ;;  %vm1807_vm6 = vcmp.eq.f32.partialorder %v1806_v36, 8.507059e+37 }
 0xa34   :  { %v1640_v19 = vadd.f32 %v1638_v16, %v2733_v5  ;;  %v1647_v20 = vadd.f32 %v1645_v32, %v2787_v50  ;;  %v1801_v38 = vadd.f32 %v2226_v57, %v1800_v24  ;;  %1936 = vmatpush.msrb.mxu0 %v1917_v1  ;;  %v1982_v32 = vld [vmem:[%s3270_s15 + $0x8] sm:$0xff]  ;;  %v2133_v24 = vld [vmem:[%s3269_s14] ss:$0 sm:$0xff] }
 0xa35   :  { %v1814_v22 = vadd.f32 %v1812_v13, %v2769_v33  ;;  %2105 = vmatmul.msk.f32.vlgmr.msrb.gmra.mxu0 %vm326_vm0, %v2930_v28 }
 0xa36   :  { %2093 = vmatmul.msk.f32.vlgmr.msra.gmra.mxu2 %vm143_vm3, %v1647_v20  ;;  %2095 = vst.msk [vmem:[%s3273_s18 + $0x20] sm:$0xff] %vm143_vm3, %v1647_v20  ;;  %v1642_v56 = vmul.f32 %v1640_v19, %v2735_v6  ;;  %v1805_v37 = vsel %vm1804_vm4, %v2226_v57, %v1801_v38  ;;  %v1913_v57 = vld [vmem:[%s3267_s12] sm:$0xff] }
 0xa37   :  { %v1825_v60 = vpop.permute.xlu1 %1824  ;;  %v1816_v30 = vmul.f32 %v1814_v22, %v2735_v6  ;;  %v1810_v33 = vsel %vm1807_vm6, %v1809_v26, %v1805_v37  ;;  %1965 = vmatpush.msrb.mxu1 %v1913_v57 }
 0xa38   :  { %1845 = vmatpush.msrb.mxu2 %v1825_v60  ;;  %v1644_v23 = vadd.f32 %v1642_v56, %v2744_v18  ;;  %v1811_v58 = vmul.f32 %v3065_v8, %v1810_v33 }
 0xa39   :  { %v1676_v45 = vpop.permute.xlu0 %1675  ;;  %v1818_v21 = vadd.f32 %v1816_v30, %v2780_v48  ;;  %v2134_v30 = vld [vmem:[#allocation2] ss:$0 sm:$0xff] }
 0xa3a   :  { %1696 = vmatpush.msrb.mxu3 %v1676_v45  ;;  %v1646_v43 = vmul.f32 %v1644_v23, %v2760_v31  ;;  %v1813_v46 = vmul.f32 %v1811_v58, %v2651_v10  ;;  %2007 = vmatpush.msra.mxu2 %v1984_v15 }
 0xa3b   :  { %v1820_v17 = vmul.f32 %v1818_v21, %v2760_v31 }
 0xa3c   :  { %1871 = vmatpush.msra.mxu3 %v1851_v34  ;;  %v1648_v61 = vadd.f32 %v1646_v43, %v2772_v39  ;;  %v1815_v54 = vadd.f32 %v1813_v46, %v2733_v5 }
 0xa3d   :  { %v1822_v62 = vadd.f32 %v1820_v17, %v2787_v50  ;;  %2106 = vmatmul.msk.f32.gmra.mxu0 %vm326_vm0, %v2937_v29 }
 0xa3e   :  { %2094 = vmatmul.msk.f32.vlgmr.msrb.gmra.mxu3 %vm143_vm3, %v1648_v61  ;;  %2096 = vst.msk [vmem:[%s3273_s18 + $0x28] sm:$0xff] %vm143_vm3, %v1648_v61  ;;  %v1817_v10 = vmul.f32 %v1815_v54, %v2735_v6 }
 0xa3f   :  { %2101 = vmatmul.msk.f32.vlgmr.msrb.gmra.mxu2 %vm143_vm3, %v1822_v62  ;;  %2103 = vst.msk [vmem:[%s3273_s18 + $0x30] sm:$0xff] %vm143_vm3, %v1822_v62 }
 0xa40   :  { %v1819_v5 = vadd.f32 %v1817_v10, %v2744_v18 }
 0xa42   :  { %v1821_v48 = vmul.f32 %v1819_v5, %v2760_v31 }
 0xa44   :  { %v1823_v50 = vadd.f32 %v1821_v48, %v2772_v39 }
 0xa46   :  { %2102 = vmatmul.msk.f32.vlgmr.msra.gmra.mxu3 %vm143_vm3, %v1823_v50  ;;  %2104 = vst.msk [vmem:[%s3273_s18 + $0x38] sm:$0xff] %vm143_vm3, %v1823_v50 }
 0xa83   :  { %v1349_v35 = vpop.f32.mrf.mxu3 }
 0xa84   :  { %v1323_v8 = vpop.f32.mrf.mxu2 }
 0xaab   :  { %v1497_v40 = vpop.f32.mrf.mxu2 }
 0xaac   :  { %1881 = vrot.lane.b32.xlu0 %v1497_v40, %s2252_s22 }
 0xab2   :  { %v1938_v13 = vpop.f32.mrf.mxu0 }
 0xab4   :  { %v1523_v49 = vpop.f32.mrf.mxu3 }
 0xab5   :  { %1883 = vrot.lane.b32.xlu0 %v1523_v49, %s2252_s22 }
 0xab9   :  { %v1672_v6 = vpop.f32.mrf.mxu2 }
 0xaba   :  { %1889 = vrot.lane.b32.xlu1 %v1672_v6, %s2253_s16  ;;  %v1941_v38 = vpop.f32.mrf.mxu0 }
 0xac1   :  { %v1698_v18 = vpop.f32.mrf.mxu3 }
 0xac2   :  { %v1847_v31 = vpop.f32.mrf.mxu2  ;;  %1891 = vrot.lane.b32.xlu1 %v1698_v18, %s2253_s16 }
 0xac3   :  { %1897 = vrot.lane.b32.xlu2 %v1847_v31, %s2254_s23 }
 0xac9   :  { %v1873_v39 = vpop.f32.mrf.mxu3 }
 0xacb   :  { %1899 = vrot.lane.b32.xlu2 %v1873_v39, %s2254_s23 }
 0xb1d   :  { %v1898_v47 = vpop.permute.xlu2 %1897 }
 0xb1e   :  { %v1882_v55 = vpop.permute.xlu0 %1881 }
 0xb1f   :  { %v1903_v52 = vsel %vm143_vm3, %v1323_v8, %v1882_v55 }
 0xb25   :  { %v1900_v41 = vpop.permute.xlu2 %1899 }
 0xb27   :  { %v1884_v3 = vpop.permute.xlu0 %1883 }
 0xb28   :  { %v1904_v28 = vsel %vm143_vm3, %v1349_v35, %v1884_v3  ;;  %vm2018_vm3 = vcmask 7168  }
 0xb2c   :  { %v1890_v53 = vpop.permute.xlu1 %1889 }
 0xb2d   :  { %v1905_v59 = vsel %vm1106_vm11, %v1903_v52, %v1890_v53 }
 0xb2e   :  { %v1907_v0 = vsel %vm1109_vm12, %v1905_v59, %v1898_v47 }
 0xb2f   :  { %v1909_v2 = vmax.f32 %v1907_v0, 0.0 }
 0xb31   :  { %v1911_v4 = vadd.f32 %v1909_v2, %v2948_v42  ;;  %v1983_v42 = vld [vmem:[%s3270_s15 + $0x10] sm:$0xff] }
 0xb32   :  { %2008 = vmatpush.msra.mxu2 %v1983_v42 }
 0xb33   :  { %2107 = vmatmul.msk.f32.vlgmr.msrb.gmra.mxu1 %vm326_vm0, %v1911_v4 }
 0xb34   :  { %v1892_v7 = vpop.permute.xlu1 %1891  ;;  %2009 = vmatpush.msra.mxu2 %v1982_v32 }
 0xb35   :  { %v1906_v29 = vsel %vm1106_vm11, %v1904_v28, %v1892_v7 }
 0xb36   :  { %v1908_v12 = vsel %vm1109_vm12, %v1906_v29, %v1900_v41 }
 0xb37   :  { %v1910_v14 = vmax.f32 %v1908_v12, 0.0 }
 0xb39   :  { %v1912_v16 = vadd.f32 %v1910_v14, %v2956_v9  ;;  %v1981_v9 = vld [vmem:[%s3270_s15] sm:$0xff] }
 0xb3a   :  { %2010 = vmatpush.msra.mxu2 %v1981_v9 }
 0xb3b   :  { %2108 = vmatmul.msk.f32.gmra.mxu1 %vm326_vm0, %v1912_v16 }
 0xbb0   :  { %v1967_v36 = vpop.f32.mrf.mxu1 }
 0xbb1   :  { %v1968_v19 = vadd.f32 %v1967_v36, %v1938_v13 }
 0xbb3   :  { %v1977_v20 = vadd.f32 %v2133_v24, %v1968_v19 }
 0xbb5   :  { %v1979_v22 = vmax.f32 %v1977_v20, 0.0 }
 0xbb7   :  { %2109 = vmatmul.msk.f32.vlgmr.msra.gmra.mxu2 %vm326_vm0, %v1979_v22 }
 0xbb8   :  { %v1970_v26 = vpop.f32.mrf.mxu1 }
 0xbb9   :  { %v1971_v56 = vadd.f32 %v1970_v26, %v1941_v38 }
 0xbbb   :  { %v1978_v37 = vadd.f32 %v2133_v24, %v1971_v56 }
 0xbbd   :  { %v1980_v60 = vmax.f32 %v1978_v37, 0.0 }
 0xbbf   :  { %2110 = vmatmul.msk.f32.gmra.mxu2 %vm326_vm0, %v1980_v60 }
 0xc3a   :  { %v2012_v33 = vpop.f32.mrf.mxu2 }
 0xc3b   :  { %v2013_v23 = vadd.f32 %v2134_v30, %v2012_v33 }
 0xc3d   :  { %2019 = vst.msk [vmem:[%s3272_s17] sm:$0xff] %vm2018_vm3, %v2013_v23 }
 0xc42   :  { %v2015_v58 = vpop.f32.mrf.mxu2 }
 0xc43   :  { %v2016_v45 = vadd.f32 %v2134_v30, %v2015_v58 }
 0xc45   :  { %2020 = vst.msk [vmem:[%s3272_s17 + $0x8] sm:$0xff] %vm2018_vm3, %v2016_v45 }
 0xc46   :  { %2029 = vsyncpa [#allocation4], 1 }

</bundles_post_ra>
